<compile_context>
chip_gen: v7x
topology: tpu7x:2x2x1
jax: 0.10.0
libtpu: 0.0.40
codegen_flags: <defaults>
</compile_context>

<pallas_src>
import functools

import jax
import jax.numpy as jnp
from jax.experimental import pallas as pl
from jax.experimental.pallas import tpu as pltpu


# ----------------------------------------------------------------------------
# Pallas kernels
# ----------------------------------------------------------------------------
def _conv_bn_lrelu_kernel(x_ref, w_ref, shift_ref, o_ref, *, ws, c4):
    """Fused 4x4/stride-2 conv + BN affine + LeakyReLU for one batch element.

    x_ref:     (Hs*Ws, 4*Cin)  bf16  space-to-depth input rows
    w_ref:     (16*Cin, Cout)  bf16  BN-scale-folded weights, slab order (u,v)
    shift_ref: (1, Cout)       f32   folded BN shift (+ conv bias)
    o_ref:     (Ho*Ws, Cout)   bf16  output rows (last column of each spatial
                                     row is junk; dropped by the wrapper)
    """
    l_out, f = o_ref.shape
    acc = jnp.zeros((l_out, f), jnp.float32)
    for u in range(2):
        for v in range(2):
            xs = x_ref[pl.ds(u * ws + v, l_out), :]
            wk = w_ref[pl.ds((u * 2 + v) * c4, c4), :]
            acc = acc + jnp.dot(xs, wk, preferred_element_type=jnp.float32)
    y = acc + shift_ref[...]
    y = jnp.where(y > 0, y, 0.2 * y)
    o_ref[...] = y.astype(o_ref.dtype)


def _final_conv_kernel(x_ref, w_ref, shift_ref, w4_ref, b4_ref, o_ref, *,
                       ws, c4):
    """conv3 (+BN, +LeakyReLU) fused with conv4 (full 4x4 dot) + sigmoid."""
    l_out, f = w4_ref.shape
    acc = jnp.zeros((l_out, f), jnp.float32)
    for u in range(2):
        for v in range(2):
            xs = x_ref[pl.ds(u * ws + v, l_out), :]
            wk = w_ref[pl.ds((u * 2 + v) * c4, c4), :]
            acc = acc + jnp.dot(xs, wk, preferred_element_type=jnp.float32)
    y = acc + shift_ref[...]
    y = jnp.where(y > 0, y, 0.2 * y)
    # conv4: dot the (L, F) conv3 activation block against the pre-arranged
    # conv4 weights (junk columns carry zero weight), then sigmoid.
    z = jnp.sum(y * w4_ref[...], keepdims=True) + b4_ref[...]
    o_ref[...] = pl.reciprocal(1.0 + jnp.exp(-z), approx=True).astype(o_ref.dtype)


# ----------------------------------------------------------------------------
# Wrapper glue (all ~1x data: pad, space-to-depth reshape/transpose)
# ----------------------------------------------------------------------------
def _space_to_depth(x):
    """NHWC input of a 4x4/s2/p1 conv -> (N, Hs*Ws, 4*C) rows + geometry."""
    n, h, w, c = x.shape
    ho, wo = h // 2, w // 2
    hs, ws = ho + 2, wo + 1
    # (1,1) spatial conv padding; 2 extra zero rows at the bottom keep the
    # kernel's shifted reads for the (discarded) junk column in bounds.
    xp = jnp.pad(x, ((0, 0), (1, 3), (1, 1), (0, 0)))
    x2 = xp.reshape(n, hs, 2, ws, 2, c).transpose(0, 1, 3, 2, 4, 5)
    x2 = x2.reshape(n, hs * ws, 4 * c)
    return x2, ho, wo, ws


def conv_block(x, layer):
    n, _, _, c = x.shape
    x2, ho, wo, ws = _space_to_depth(x)
    f = layer["wmat"].shape[1]
    l_out = ho * ws
    y = pl.pallas_call(
        functools.partial(_conv_bn_lrelu_kernel, ws=ws, c4=4 * c),
        out_shape=jax.ShapeDtypeStruct((n, l_out, f), jnp.bfloat16),
        grid_spec=pltpu.PrefetchScalarGridSpec(
            num_scalar_prefetch=0,
            grid=(n,),
            in_specs=[
                pl.BlockSpec((None, x2.shape[1], 4 * c), lambda i: (i, 0, 0)),
                pl.BlockSpec((16 * c, f), lambda i: (0, 0)),
                pl.BlockSpec((1, f), lambda i: (0, 0)),
            ],
            out_specs=pl.BlockSpec((None, l_out, f), lambda i: (i, 0, 0)),
        ),
        compiler_params=pltpu.CompilerParams(
            dimension_semantics=("parallel",)),
    )(x2, layer["wmat"], layer["shift"])
    # drop the junk column -> NHWC activations for the next layer
    return y.reshape(n, ho, ws, f)[:, :, :wo, :]


def final_block(x, layer3, layer4):
    n, _, _, c = x.shape
    x2, ho, wo, ws = _space_to_depth(x)
    f = layer3["wmat"].shape[1]
    l_out = ho * ws
    assert layer4["w4a"].shape == (l_out, f)  # conv4 covers conv3's full map
    out = pl.pallas_call(
        functools.partial(_final_conv_kernel, ws=ws, c4=4 * c),
        out_shape=jax.ShapeDtypeStruct((n, 1, 1), jnp.float32),
        grid_spec=pltpu.PrefetchScalarGridSpec(
            num_scalar_prefetch=0,
            grid=(n,),
            in_specs=[
                pl.BlockSpec((None, x2.shape[1], 4 * c), lambda i: (i, 0, 0)),
                pl.BlockSpec((16 * c, f), lambda i: (0, 0)),
                pl.BlockSpec((1, f), lambda i: (0, 0)),
                pl.BlockSpec((l_out, f), lambda i: (0, 0)),
                pl.BlockSpec((1, 1), lambda i: (0, 0)),
            ],
            out_specs=pl.BlockSpec((None, 1, 1), lambda i: (i, 0, 0)),
        ),
        compiler_params=pltpu.CompilerParams(
            dimension_semantics=("parallel",)),
    )(x2, layer3["wmat"], layer3["shift"], layer4["w4a"], layer4["b4"])
    return out.reshape(n, 1, 1, 1)


def discriminator_forward(prepped, img):
    """img: (N, C, H, W) f32 (PyTorch layout). Returns (N, 1, 1, 1) f32."""
    x = img.transpose(0, 2, 3, 1).astype(jnp.bfloat16)  # NHWC, bf16 end-to-end
    x = conv_block(x, prepped["conv1"])
    x = conv_block(x, prepped["conv2"])
    return final_block(x, prepped["conv3"], prepped["conv4"])


# ----------------------------------------------------------------------------
# One-time weight prep (layout, BN folding, bf16 cast) -- hoisted out of fwd
# ----------------------------------------------------------------------------
def prepare_params(params, eps=1e-5):
    def prep(p):
        w, b = p["w"], p["b"]                    # OIHW (F, C, 4, 4)
        f, c = w.shape[0], w.shape[1]
        wt = w.transpose(2, 3, 1, 0)             # (ki, kj, C, F)
        wt = wt.reshape(2, 2, 2, 2, c, f)        # (u, p, v, q, C, F)
        wt = wt.transpose(0, 2, 1, 3, 4, 5)      # (u, v, p, q, C, F)
        wmat = wt.reshape(16 * c, f)
        scale = p["gamma"] / jnp.sqrt(p["rvar"] + eps)
        shift = p["beta"] + (b - p["rmean"]) * scale
        return {"wmat": (wmat * scale[None, :]).astype(jnp.bfloat16),
                "shift": shift.reshape(1, f).astype(jnp.float32)}

    w4, b4 = params["conv4"]["w"], params["conv4"]["b"]   # (1, C3, 4, 4), (1,)
    kh, kw = w4.shape[2], w4.shape[3]
    w4a = jnp.pad(w4[0].transpose(1, 2, 0),                # (kh, kw, C3)
                  ((0, 0), (0, 1), (0, 0)))                # junk-col weight = 0
    w4a = w4a.reshape(kh * (kw + 1), -1).astype(jnp.float32)
    return {
        "conv1": prep(params["conv1"]),
        "conv2": prep(params["conv2"]),
        "conv3": prep(params["conv3"]),
        "conv4": {"w4a": w4a, "b4": b4.reshape(1, 1).astype(jnp.float32)},
    }


# ----------------------------------------------------------------------------
# Pure-JAX f32 reference (for correctness check)
# ----------------------------------------------------------------------------
def _ref_conv(x, w, b, stride, pad):
    y = jax.lax.conv_general_dilated(
        x, w, (stride, stride), [(pad, pad), (pad, pad)],
        dimension_numbers=("NCHW", "OIHW", "NCHW"))
    return y + b[None, :, None, None]


def _ref_bn(x, p, eps=1e-5):
    return ((x - p["rmean"][None, :, None, None])
            / jnp.sqrt(p["rvar"][None, :, None, None] + eps)
            * p["gamma"][None, :, None, None] + p["beta"][None, :, None, None])


def reference_forward(params, img):
    x = jax.nn.leaky_relu(
        _ref_bn(_ref_conv(img, params["conv1"]["w"], params["conv1"]["b"], 2, 1),
                params["conv1"]), 0.2)
    x = jax.nn.leaky_relu(
        _ref_bn(_ref_conv(x, params["conv2"]["w"], params["conv2"]["b"], 2, 1),
                params["conv2"]), 0.2)
    x = jax.nn.leaky_relu(
        _ref_bn(_ref_conv(x, params["conv3"]["w"], params["conv3"]["b"], 2, 1),
                params["conv3"]), 0.2)
    x = jax.nn.sigmoid(
        _ref_conv(x, params["conv4"]["w"], params["conv4"]["b"], 1, 0))
    return x


# ----------------------------------------------------------------------------
# Deterministic synthetic parameter init (DCGAN-style normal_init)
# ----------------------------------------------------------------------------
def init_params(key, d=16, c=1):
    def conv_p(key, cout, cin, k, with_bn):
        ks = jax.random.split(key, 6)
        p = {
            "w": 0.02 * jax.random.normal(ks[0], (cout, cin, k, k), jnp.float32),
            "b": 0.01 * jax.random.normal(ks[1], (cout,), jnp.float32),
        }
        if with_bn:
            p["gamma"] = 1.0 + 0.1 * jax.random.normal(ks[2], (cout,), jnp.float32)
            p["beta"] = 0.1 * jax.random.normal(ks[3], (cout,), jnp.float32)
            p["rmean"] = 0.1 * jax.random.normal(ks[4], (cout,), jnp.float32)
            p["rvar"] = 0.9 + 0.2 * jax.random.uniform(ks[5], (cout,), jnp.float32)
        return p

    k1, k2, k3, k4 = jax.random.split(key, 4)
    return {
        "conv1": conv_p(k1, d // 2, c, 4, True),
        "conv2": conv_p(k2, d * 2, d // 2, 4, True),
        "conv3": conv_p(k3, d * 4, d * 2, 4, True),
        "conv4": conv_p(k4, 1, d * 4, 4, False),
    }


if __name__ == "__main__":
    key = jax.random.PRNGKey(0)
    kp, kx = jax.random.split(key)

    d, c = 16, 1                       # small d (PyTorch default d=128)
    batch, spatial = 2, 32             # 32 -> 16 -> 8 -> 4 -> 1
    params = init_params(kp, d=d, c=c)
    img = jax.random.normal(kx, (batch, c, spatial, spatial), jnp.float32)

    prepped = prepare_params(params)
    fwd = jax.jit(discriminator_forward)
    out = jax.block_until_ready(fwd(prepped, img))

    assert out.shape == (batch, 1, 1, 1), out.shape

    ref = jax.block_until_ready(reference_forward(params, img))
    # bf16 MXU inputs (f32 accumulation) -> loosened tolerance vs f32 reference
    err = float(jnp.max(jnp.abs(out.astype(jnp.float32) - ref)))
    assert err < 2e-2, err

    print("KERNEL_OK")
</pallas_src>

<mosaic_0001>
module attributes {stable_mosaic.version = 11 : i64} {
  func.func @_conv_bn_lrelu_kernel(%arg0: i32, %arg1: memref<1x306x4xbf16, #tpu.memory_space<vmem>>, %arg2: memref<16x8xbf16, #tpu.memory_space<vmem>>, %arg3: memref<1x8xf32, #tpu.memory_space<vmem>>, %arg4: memref<1x272x8xbf16, #tpu.memory_space<vmem>>) attributes {dimension_semantics = [#tpu.dimension_semantics<parallel>], iteration_bounds = array<i64: 2>, scalar_prefetch = 0 : i64, scratch_operands = 0 : i64, tpu.core_type = #tpu.core_type<tc>, window_params = [{transform_indices = @transform_0, window_bounds = array<i64: 1, 306, 4>}, {pipeline_mode = #tpu.pipeline_mode<synchronous>, transform_indices = @transform_1, window_bounds = array<i64: 16, 8>}, {pipeline_mode = #tpu.pipeline_mode<synchronous>, transform_indices = @transform_2, window_bounds = array<i64: 1, 8>}, {transform_indices = @transform_3, window_bounds = array<i64: 1, 272, 8>}]} {
    %cst = arith.constant 0.000000e+00 : f32
    %0 = vector.broadcast %cst : f32 to vector<272x8xf32>
    %c0 = arith.constant 0 : index
    %c0_0 = arith.constant 0 : index
    %c0_1 = arith.constant 0 : index
    %1 = vector.load %arg1[%c0, %c0_0, %c0_1] : memref<1x306x4xbf16, #tpu.memory_space<vmem>>, vector<1x272x4xbf16>
    %2 = vector.shape_cast %1 : vector<1x272x4xbf16> to vector<272x4xbf16>
    %c0_2 = arith.constant 0 : index
    %c0_3 = arith.constant 0 : index
    %3 = vector.load %arg2[%c0_2, %c0_3] : memref<16x8xbf16, #tpu.memory_space<vmem>>, vector<4x8xbf16>
    %cst_4 = arith.constant dense<0.000000e+00> : vector<272x8xf32>
    %4 = tpu.matmul %2, %3, %cst_4 {dimension_numbers = #tpu.dot_dimension_numbers<[1], [0], [0], [1], [0, 0, 1, 1], [], []>} : vector<272x4xbf16>, vector<4x8xbf16>, vector<272x8xf32> -> vector<272x8xf32>
    %5 = arith.addf %0, %4 : vector<272x8xf32>
    %c0_5 = arith.constant 0 : index
    %c1 = arith.constant 1 : index
    %c0_6 = arith.constant 0 : index
    %6 = vector.load %arg1[%c0_5, %c1, %c0_6] : memref<1x306x4xbf16, #tpu.memory_space<vmem>>, vector<1x272x4xbf16>
    %7 = vector.shape_cast %6 : vector<1x272x4xbf16> to vector<272x4xbf16>
    %c4 = arith.constant 4 : index
    %c0_7 = arith.constant 0 : index
    %8 = vector.load %arg2[%c4, %c0_7] : memref<16x8xbf16, #tpu.memory_space<vmem>>, vector<4x8xbf16>
    %cst_8 = arith.constant dense<0.000000e+00> : vector<272x8xf32>
    %9 = tpu.matmul %7, %8, %cst_8 {dimension_numbers = #tpu.dot_dimension_numbers<[1], [0], [0], [1], [0, 0, 1, 1], [], []>} : vector<272x4xbf16>, vector<4x8xbf16>, vector<272x8xf32> -> vector<272x8xf32>
    %10 = arith.addf %5, %9 : vector<272x8xf32>
    %c0_9 = arith.constant 0 : index
    %c17 = arith.constant 17 : index
    %c0_10 = arith.constant 0 : index
    %11 = vector.load %arg1[%c0_9, %c17, %c0_10] : memref<1x306x4xbf16, #tpu.memory_space<vmem>>, vector<1x272x4xbf16>
    %12 = vector.shape_cast %11 : vector<1x272x4xbf16> to vector<272x4xbf16>
    %c8 = arith.constant 8 : index
    %c0_11 = arith.constant 0 : index
    %13 = vector.load %arg2[%c8, %c0_11] : memref<16x8xbf16, #tpu.memory_space<vmem>>, vector<4x8xbf16>
    %cst_12 = arith.constant dense<0.000000e+00> : vector<272x8xf32>
    %14 = tpu.matmul %12, %13, %cst_12 {dimension_numbers = #tpu.dot_dimension_numbers<[1], [0], [0], [1], [0, 0, 1, 1], [], []>} : vector<272x4xbf16>, vector<4x8xbf16>, vector<272x8xf32> -> vector<272x8xf32>
    %15 = arith.addf %10, %14 : vector<272x8xf32>
    %c0_13 = arith.constant 0 : index
    %c18 = arith.constant 18 : index
    %c0_14 = arith.constant 0 : index
    %16 = vector.load %arg1[%c0_13, %c18, %c0_14] : memref<1x306x4xbf16, #tpu.memory_space<vmem>>, vector<1x272x4xbf16>
    %17 = vector.shape_cast %16 : vector<1x272x4xbf16> to vector<272x4xbf16>
    %c12 = arith.constant 12 : index
    %c0_15 = arith.constant 0 : index
    %18 = vector.load %arg2[%c12, %c0_15] : memref<16x8xbf16, #tpu.memory_space<vmem>>, vector<4x8xbf16>
    %cst_16 = arith.constant dense<0.000000e+00> : vector<272x8xf32>
    %19 = tpu.matmul %17, %18, %cst_16 {dimension_numbers = #tpu.dot_dimension_numbers<[1], [0], [0], [1], [0, 0, 1, 1], [], []>} : vector<272x4xbf16>, vector<4x8xbf16>, vector<272x8xf32> -> vector<272x8xf32>
    %20 = arith.addf %15, %19 : vector<272x8xf32>
    %c0_17 = arith.constant 0 : index
    %c0_18 = arith.constant 0 : index
    %21 = vector.load %arg3[%c0_17, %c0_18] : memref<1x8xf32, #tpu.memory_space<vmem>>, vector<1x8xf32>
    %22 = vector.broadcast %21 : vector<1x8xf32> to vector<272x8xf32>
    %23 = arith.addf %20, %22 : vector<272x8xf32>
    %cst_19 = arith.constant 0.000000e+00 : f32
    %24 = vector.broadcast %cst_19 : f32 to vector<272x8xf32>
    %25 = arith.cmpf ogt, %23, %24 : vector<272x8xf32>
    %cst_20 = arith.constant 2.000000e-01 : f32
    %26 = vector.broadcast %cst_20 : f32 to vector<272x8xf32>
    %27 = arith.mulf %26, %23 : vector<272x8xf32>
    %28 = arith.select %25, %23, %27 : vector<272x8xi1>, vector<272x8xf32>
    %29 = arith.truncf %28 : vector<272x8xf32> to vector<272x8xbf16>
    %c0_21 = arith.constant 0 : index
    %c0_22 = arith.constant 0 : index
    %c0_23 = arith.constant 0 : index
    %30 = vector.load %arg4[%c0_21, %c0_22, %c0_23] : memref<1x272x8xbf16, #tpu.memory_space<vmem>>, vector<1x272x8xbf16>
    %31 = vector.shape_cast %30 : vector<1x272x8xbf16> to vector<272x8xbf16>
    %32 = vector.shape_cast %29 : vector<272x8xbf16> to vector<1x272x8xbf16>
    tpu.vector_store %arg4[%c0_21, %c0_22, %c0_23], %32 {strides = array<i32>} : memref<1x272x8xbf16, #tpu.memory_space<vmem>>, vector<1x272x8xbf16>,
    return
  }
  func.func @transform_0(%arg0: i32) -> (i32, i32, i32) {
    %c0_i32 = arith.constant 0 : i32
    %c0_i32_0 = arith.constant 0 : i32
    %c0_i32_1 = arith.constant 0 : i32
    return %arg0, %c0_i32, %c0_i32_0 : i32, i32, i32
  }
  func.func @transform_1(%arg0: i32) -> (i32, i32) {
    %c0_i32 = arith.constant 0 : i32
    %c0_i32_0 = arith.constant 0 : i32
    %c0_i32_1 = arith.constant 0 : i32
    return %c0_i32, %c0_i32_0 : i32, i32
  }
  func.func @transform_2(%arg0: i32) -> (i32, i32) {
    %c0_i32 = arith.constant 0 : i32
    %c0_i32_0 = arith.constant 0 : i32
    %c0_i32_1 = arith.constant 0 : i32
    return %c0_i32, %c0_i32_0 : i32, i32
  }
  func.func @transform_3(%arg0: i32) -> (i32, i32, i32) {
    %c0_i32 = arith.constant 0 : i32
    %c0_i32_0 = arith.constant 0 : i32
    %c0_i32_1 = arith.constant 0 : i32
    return %arg0, %c0_i32, %c0_i32_0 : i32, i32, i32
  }
}

module attributes {stable_mosaic.version = 11 : i64} {
  func.func @_conv_bn_lrelu_kernel(%arg0: i32, %arg1: memref<1x90x32xbf16, #tpu.memory_space<vmem>>, %arg2: memref<128x32xbf16, #tpu.memory_space<vmem>>, %arg3: memref<1x32xf32, #tpu.memory_space<vmem>>, %arg4: memref<1x72x32xbf16, #tpu.memory_space<vmem>>) attributes {dimension_semantics = [#tpu.dimension_semantics<parallel>], iteration_bounds = array<i64: 2>, scalar_prefetch = 0 : i64, scratch_operands = 0 : i64, tpu.core_type = #tpu.core_type<tc>, window_params = [{transform_indices = @transform_0, window_bounds = array<i64: 1, 90, 32>}, {pipeline_mode = #tpu.pipeline_mode<synchronous>, transform_indices = @transform_1, window_bounds = array<i64: 128, 32>}, {pipeline_mode = #tpu.pipeline_mode<synchronous>, transform_indices = @transform_2, window_bounds = array<i64: 1, 32>}, {transform_indices = @transform_3, window_bounds = array<i64: 1, 72, 32>}]} {
    %cst = arith.constant 0.000000e+00 : f32
    %0 = vector.broadcast %cst : f32 to vector<72x32xf32>
    %c0 = arith.constant 0 : index
    %c0_0 = arith.constant 0 : index
    %c0_1 = arith.constant 0 : index
    %1 = vector.load %arg1[%c0, %c0_0, %c0_1] : memref<1x90x32xbf16, #tpu.memory_space<vmem>>, vector<1x72x32xbf16>
    %2 = vector.shape_cast %1 : vector<1x72x32xbf16> to vector<72x32xbf16>
    %c0_2 = arith.constant 0 : index
    %c0_3 = arith.constant 0 : index
    %3 = vector.load %arg2[%c0_2, %c0_3] : memref<128x32xbf16, #tpu.memory_space<vmem>>, vector<32x32xbf16>
    %cst_4 = arith.constant dense<0.000000e+00> : vector<72x32xf32>
    %4 = tpu.matmul %2, %3, %cst_4 {dimension_numbers = #tpu.dot_dimension_numbers<[1], [0], [0], [1], [0, 0, 1, 1], [], []>} : vector<72x32xbf16>, vector<32x32xbf16>, vector<72x32xf32> -> vector<72x32xf32>
    %5 = arith.addf %0, %4 : vector<72x32xf32>
    %c0_5 = arith.constant 0 : index
    %c1 = arith.constant 1 : index
    %c0_6 = arith.constant 0 : index
    %6 = vector.load %arg1[%c0_5, %c1, %c0_6] : memref<1x90x32xbf16, #tpu.memory_space<vmem>>, vector<1x72x32xbf16>
    %7 = vector.shape_cast %6 : vector<1x72x32xbf16> to vector<72x32xbf16>
    %c32 = arith.constant 32 : index
    %c0_7 = arith.constant 0 : index
    %8 = vector.load %arg2[%c32, %c0_7] : memref<128x32xbf16, #tpu.memory_space<vmem>>, vector<32x32xbf16>
    %cst_8 = arith.constant dense<0.000000e+00> : vector<72x32xf32>
    %9 = tpu.matmul %7, %8, %cst_8 {dimension_numbers = #tpu.dot_dimension_numbers<[1], [0], [0], [1], [0, 0, 1, 1], [], []>} : vector<72x32xbf16>, vector<32x32xbf16>, vector<72x32xf32> -> vector<72x32xf32>
    %10 = arith.addf %5, %9 : vector<72x32xf32>
    %c0_9 = arith.constant 0 : index
    %c9 = arith.constant 9 : index
    %c0_10 = arith.constant 0 : index
    %11 = vector.load %arg1[%c0_9, %c9, %c0_10] : memref<1x90x32xbf16, #tpu.memory_space<vmem>>, vector<1x72x32xbf16>
    %12 = vector.shape_cast %11 : vector<1x72x32xbf16> to vector<72x32xbf16>
    %c64 = arith.constant 64 : index
    %c0_11 = arith.constant 0 : index
    %13 = vector.load %arg2[%c64, %c0_11] : memref<128x32xbf16, #tpu.memory_space<vmem>>, vector<32x32xbf16>
    %cst_12 = arith.constant dense<0.000000e+00> : vector<72x32xf32>
    %14 = tpu.matmul %12, %13, %cst_12 {dimension_numbers = #tpu.dot_dimension_numbers<[1], [0], [0], [1], [0, 0, 1, 1], [], []>} : vector<72x32xbf16>, vector<32x32xbf16>, vector<72x32xf32> -> vector<72x32xf32>
    %15 = arith.addf %10, %14 : vector<72x32xf32>
    %c0_13 = arith.constant 0 : index
    %c10 = arith.constant 10 : index
    %c0_14 = arith.constant 0 : index
    %16 = vector.load %arg1[%c0_13, %c10, %c0_14] : memref<1x90x32xbf16, #tpu.memory_space<vmem>>, vector<1x72x32xbf16>
    %17 = vector.shape_cast %16 : vector<1x72x32xbf16> to vector<72x32xbf16>
    %c96 = arith.constant 96 : index
    %c0_15 = arith.constant 0 : index
    %18 = vector.load %arg2[%c96, %c0_15] : memref<128x32xbf16, #tpu.memory_space<vmem>>, vector<32x32xbf16>
    %cst_16 = arith.constant dense<0.000000e+00> : vector<72x32xf32>
    %19 = tpu.matmul %17, %18, %cst_16 {dimension_numbers = #tpu.dot_dimension_numbers<[1], [0], [0], [1], [0, 0, 1, 1], [], []>} : vector<72x32xbf16>, vector<32x32xbf16>, vector<72x32xf32> -> vector<72x32xf32>
    %20 = arith.addf %15, %19 : vector<72x32xf32>
    %c0_17 = arith.constant 0 : index
    %c0_18 = arith.constant 0 : index
    %21 = vector.load %arg3[%c0_17, %c0_18] : memref<1x32xf32, #tpu.memory_space<vmem>>, vector<1x32xf32>
    %22 = vector.broadcast %21 : vector<1x32xf32> to vector<72x32xf32>
    %23 = arith.addf %20, %22 : vector<72x32xf32>
    %cst_19 = arith.constant 0.000000e+00 : f32
    %24 = vector.broadcast %cst_19 : f32 to vector<72x32xf32>
    %25 = arith.cmpf ogt, %23, %24 : vector<72x32xf32>
    %cst_20 = arith.constant 2.000000e-01 : f32
    %26 = vector.broadcast %cst_20 : f32 to vector<72x32xf32>
    %27 = arith.mulf %26, %23 : vector<72x32xf32>
    %28 = arith.select %25, %23, %27 : vector<72x32xi1>, vector<72x32xf32>
    %29 = arith.truncf %28 : vector<72x32xf32> to vector<72x32xbf16>
    %c0_21 = arith.constant 0 : index
    %c0_22 = arith.constant 0 : index
    %c0_23 = arith.constant 0 : index
    %30 = vector.load %arg4[%c0_21, %c0_22, %c0_23] : memref<1x72x32xbf16, #tpu.memory_space<vmem>>, vector<1x72x32xbf16>
    %31 = vector.shape_cast %30 : vector<1x72x32xbf16> to vector<72x32xbf16>
    %32 = vector.shape_cast %29 : vector<72x32xbf16> to vector<1x72x32xbf16>
    tpu.vector_store %arg4[%c0_21, %c0_22, %c0_23], %32 {strides = array<i32>} : memref<1x72x32xbf16, #tpu.memory_space<vmem>>, vector<1x72x32xbf16>,
    return
  }
  func.func @transform_0(%arg0: i32) -> (i32, i32, i32) {
    %c0_i32 = arith.constant 0 : i32
    %c0_i32_0 = arith.constant 0 : i32
    %c0_i32_1 = arith.constant 0 : i32
    return %arg0, %c0_i32, %c0_i32_0 : i32, i32, i32
  }
  func.func @transform_1(%arg0: i32) -> (i32, i32) {
    %c0_i32 = arith.constant 0 : i32
    %c0_i32_0 = arith.constant 0 : i32
    %c0_i32_1 = arith.constant 0 : i32
    return %c0_i32, %c0_i32_0 : i32, i32
  }
  func.func @transform_2(%arg0: i32) -> (i32, i32) {
    %c0_i32 = arith.constant 0 : i32
    %c0_i32_0 = arith.constant 0 : i32
    %c0_i32_1 = arith.constant 0 : i32
    return %c0_i32, %c0_i32_0 : i32, i32
  }
  func.func @transform_3(%arg0: i32) -> (i32, i32, i32) {
    %c0_i32 = arith.constant 0 : i32
    %c0_i32_0 = arith.constant 0 : i32
    %c0_i32_1 = arith.constant 0 : i32
    return %arg0, %c0_i32, %c0_i32_0 : i32, i32, i32
  }
}

module attributes {stable_mosaic.version = 11 : i64} {
  func.func @_final_conv_kernel(%arg0: i32, %arg1: memref<1x30x128xbf16, #tpu.memory_space<vmem>>, %arg2: memref<512x64xbf16, #tpu.memory_space<vmem>>, %arg3: memref<1x64xf32, #tpu.memory_space<vmem>>, %arg4: memref<20x64xf32, #tpu.memory_space<vmem>>, %arg5: memref<1x1xf32, #tpu.memory_space<vmem>>, %arg6: memref<1x1x1xf32, #tpu.memory_space<vmem>>) attributes {dimension_semantics = [#tpu.dimension_semantics<parallel>], iteration_bounds = array<i64: 2>, scalar_prefetch = 0 : i64, scratch_operands = 0 : i64, tpu.core_type = #tpu.core_type<tc>, window_params = [{transform_indices = @transform_0, window_bounds = array<i64: 1, 30, 128>}, {pipeline_mode = #tpu.pipeline_mode<synchronous>, transform_indices = @transform_1, window_bounds = array<i64: 512, 64>}, {pipeline_mode = #tpu.pipeline_mode<synchronous>, transform_indices = @transform_2, window_bounds = array<i64: 1, 64>}, {pipeline_mode = #tpu.pipeline_mode<synchronous>, transform_indices = @transform_3, window_bounds = array<i64: 20, 64>}, {pipeline_mode = #tpu.pipeline_mode<synchronous>, transform_indices = @transform_4, window_bounds = array<i64: 1, 1>}, {transform_indices = @transform_5, window_bounds = array<i64: 1, 1, 1>}]} {
    %cst = arith.constant 0.000000e+00 : f32
    %0 = vector.broadcast %cst : f32 to vector<20x64xf32>
    %c0 = arith.constant 0 : index
    %c0_0 = arith.constant 0 : index
    %c0_1 = arith.constant 0 : index
    %1 = vector.load %arg1[%c0, %c0_0, %c0_1] : memref<1x30x128xbf16, #tpu.memory_space<vmem>>, vector<1x20x128xbf16>
    %2 = vector.shape_cast %1 : vector<1x20x128xbf16> to vector<20x128xbf16>
    %c0_2 = arith.constant 0 : index
    %c0_3 = arith.constant 0 : index
    %3 = vector.load %arg2[%c0_2, %c0_3] : memref<512x64xbf16, #tpu.memory_space<vmem>>, vector<128x64xbf16>
    %cst_4 = arith.constant dense<0.000000e+00> : vector<20x64xf32>
    %4 = tpu.matmul %2, %3, %cst_4 {dimension_numbers = #tpu.dot_dimension_numbers<[1], [0], [0], [1], [0, 0, 1, 1], [], []>} : vector<20x128xbf16>, vector<128x64xbf16>, vector<20x64xf32> -> vector<20x64xf32>
    %5 = arith.addf %0, %4 : vector<20x64xf32>
    %c0_5 = arith.constant 0 : index
    %c1 = arith.constant 1 : index
    %c0_6 = arith.constant 0 : index
    %6 = vector.load %arg1[%c0_5, %c1, %c0_6] : memref<1x30x128xbf16, #tpu.memory_space<vmem>>, vector<1x20x128xbf16>
    %7 = vector.shape_cast %6 : vector<1x20x128xbf16> to vector<20x128xbf16>
    %c128 = arith.constant 128 : index
    %c0_7 = arith.constant 0 : index
    %8 = vector.load %arg2[%c128, %c0_7] : memref<512x64xbf16, #tpu.memory_space<vmem>>, vector<128x64xbf16>
    %cst_8 = arith.constant dense<0.000000e+00> : vector<20x64xf32>
    %9 = tpu.matmul %7, %8, %cst_8 {dimension_numbers = #tpu.dot_dimension_numbers<[1], [0], [0], [1], [0, 0, 1, 1], [], []>} : vector<20x128xbf16>, vector<128x64xbf16>, vector<20x64xf32> -> vector<20x64xf32>
    %10 = arith.addf %5, %9 : vector<20x64xf32>
    %c0_9 = arith.constant 0 : index
    %c5 = arith.constant 5 : index
    %c0_10 = arith.constant 0 : index
    %11 = vector.load %arg1[%c0_9, %c5, %c0_10] : memref<1x30x128xbf16, #tpu.memory_space<vmem>>, vector<1x20x128xbf16>
    %12 = vector.shape_cast %11 : vector<1x20x128xbf16> to vector<20x128xbf16>
    %c256 = arith.constant 256 : index
    %c0_11 = arith.constant 0 : index
    %13 = vector.load %arg2[%c256, %c0_11] : memref<512x64xbf16, #tpu.memory_space<vmem>>, vector<128x64xbf16>
    %cst_12 = arith.constant dense<0.000000e+00> : vector<20x64xf32>
    %14 = tpu.matmul %12, %13, %cst_12 {dimension_numbers = #tpu.dot_dimension_numbers<[1], [0], [0], [1], [0, 0, 1, 1], [], []>} : vector<20x128xbf16>, vector<128x64xbf16>, vector<20x64xf32> -> vector<20x64xf32>
    %15 = arith.addf %10, %14 : vector<20x64xf32>
    %c0_13 = arith.constant 0 : index
    %c6 = arith.constant 6 : index
    %c0_14 = arith.constant 0 : index
    %16 = vector.load %arg1[%c0_13, %c6, %c0_14] : memref<1x30x128xbf16, #tpu.memory_space<vmem>>, vector<1x20x128xbf16>
    %17 = vector.shape_cast %16 : vector<1x20x128xbf16> to vector<20x128xbf16>
    %c384 = arith.constant 384 : index
    %c0_15 = arith.constant 0 : index
    %18 = vector.load %arg2[%c384, %c0_15] : memref<512x64xbf16, #tpu.memory_space<vmem>>, vector<128x64xbf16>
    %cst_16 = arith.constant dense<0.000000e+00> : vector<20x64xf32>
    %19 = tpu.matmul %17, %18, %cst_16 {dimension_numbers = #tpu.dot_dimension_numbers<[1], [0], [0], [1], [0, 0, 1, 1], [], []>} : vector<20x128xbf16>, vector<128x64xbf16>, vector<20x64xf32> -> vector<20x64xf32>
    %20 = arith.addf %15, %19 : vector<20x64xf32>
    %c0_17 = arith.constant 0 : index
    %c0_18 = arith.constant 0 : index
    %21 = vector.load %arg3[%c0_17, %c0_18] : memref<1x64xf32, #tpu.memory_space<vmem>>, vector<1x64xf32>
    %22 = vector.broadcast %21 : vector<1x64xf32> to vector<20x64xf32>
    %23 = arith.addf %20, %22 : vector<20x64xf32>
    %cst_19 = arith.constant 0.000000e+00 : f32
    %24 = vector.broadcast %cst_19 : f32 to vector<20x64xf32>
    %25 = arith.cmpf ogt, %23, %24 : vector<20x64xf32>
    %cst_20 = arith.constant 2.000000e-01 : f32
    %26 = vector.broadcast %cst_20 : f32 to vector<20x64xf32>
    %27 = arith.mulf %26, %23 : vector<20x64xf32>
    %28 = arith.select %25, %23, %27 : vector<20x64xi1>, vector<20x64xf32>
    %c0_21 = arith.constant 0 : index
    %c0_22 = arith.constant 0 : index
    %29 = vector.load %arg4[%c0_21, %c0_22] : memref<20x64xf32, #tpu.memory_space<vmem>>, vector<20x64xf32>
    %30 = arith.mulf %28, %29 : vector<20x64xf32>
    %31 = vector.shape_cast %30 : vector<20x64xf32> to vector<1x20x64xf32>
    %cst_23 = arith.constant dense<0.000000e+00> : vector<1xf32>
    %32 = vector.multi_reduction <add>, %31, %cst_23 [1, 2] : vector<1x20x64xf32> to vector<1xf32>
    %33 = vector.shape_cast %32 : vector<1xf32> to vector<1x1x1xf32>
    %34 = vector.extract %33[0, 0, 0] : f32 from vector<1x1x1xf32>
    %35 = vector.broadcast %34 : f32 to vector<1x1xf32>
    %c0_24 = arith.constant 0 : index
    %c0_25 = arith.constant 0 : index
    %36 = vector.load %arg5[%c0_24, %c0_25] : memref<1x1xf32, #tpu.memory_space<vmem>>, vector<1x1xf32>
    %37 = arith.addf %35, %36 : vector<1x1xf32>
    %cst_26 = arith.constant 0.000000e+00 : f32
    %38 = vector.broadcast %cst_26 : f32 to vector<1x1xf32>
    %39 = arith.subf %38, %37 : vector<1x1xf32>
    %40 = math.exp %39 : vector<1x1xf32>
    %cst_27 = arith.constant 1.000000e+00 : f32
    %41 = vector.broadcast %cst_27 : f32 to vector<1x1xf32>
    %42 = arith.addf %41, %40 : vector<1x1xf32>
    %43 = tpu.reciprocal %42 {approx = true} : vector<1x1xf32> -> vector<1x1xf32>
    %c0_28 = arith.constant 0 : index
    %c0_29 = arith.constant 0 : index
    %c0_30 = arith.constant 0 : index
    %44 = vector.load %arg6[%c0_28, %c0_29, %c0_30] : memref<1x1x1xf32, #tpu.memory_space<vmem>>, vector<1x1x1xf32>
    %45 = vector.shape_cast %44 : vector<1x1x1xf32> to vector<1x1xf32>
    %46 = vector.shape_cast %43 : vector<1x1xf32> to vector<1x1x1xf32>
    tpu.vector_store %arg6[%c0_28, %c0_29, %c0_30], %46 {strides = array<i32>} : memref<1x1x1xf32, #tpu.memory_space<vmem>>, vector<1x1x1xf32>,
    return
  }
  func.func @transform_0(%arg0: i32) -> (i32, i32, i32) {
    %c0_i32 = arith.constant 0 : i32
    %c0_i32_0 = arith.constant 0 : i32
    %c0_i32_1 = arith.constant 0 : i32
    return %arg0, %c0_i32, %c0_i32_0 : i32, i32, i32
  }
  func.func @transform_1(%arg0: i32) -> (i32, i32) {
    %c0_i32 = arith.constant 0 : i32
    %c0_i32_0 = arith.constant 0 : i32
    %c0_i32_1 = arith.constant 0 : i32
    return %c0_i32, %c0_i32_0 : i32, i32
  }
  func.func @transform_2(%arg0: i32) -> (i32, i32) {
    %c0_i32 = arith.constant 0 : i32
    %c0_i32_0 = arith.constant 0 : i32
    %c0_i32_1 = arith.constant 0 : i32
    return %c0_i32, %c0_i32_0 : i32, i32
  }
  func.func @transform_3(%arg0: i32) -> (i32, i32) {
    %c0_i32 = arith.constant 0 : i32
    %c0_i32_0 = arith.constant 0 : i32
    %c0_i32_1 = arith.constant 0 : i32
    return %c0_i32, %c0_i32_0 : i32, i32
  }
  func.func @transform_4(%arg0: i32) -> (i32, i32) {
    %c0_i32 = arith.constant 0 : i32
    %c0_i32_0 = arith.constant 0 : i32
    %c0_i32_1 = arith.constant 0 : i32
    return %c0_i32, %c0_i32_0 : i32, i32
  }
  func.func @transform_5(%arg0: i32) -> (i32, i32, i32) {
    %c0_i32 = arith.constant 0 : i32
    %c0_i32_0 = arith.constant 0 : i32
    %c0_i32_1 = arith.constant 0 : i32
    return %arg0, %c0_i32, %c0_i32_0 : i32, i32, i32
  }
}

</mosaic_0001>

<bundles_post_ra>
// kernel: discriminator_forward.3
= control target key start
LH: loop header
LB: loop body
LE: loop exit
PB: predicated region body
PF: predicated region fallthrough
CT: control target
= control target key end

     0   :  { %s2683_s12 = smov 0   ;;  %s3230_s0 = inlined_call_operand.vmem [shape: bf16[2,306,4], index: 0, kind: input, shape index: {}]   ;;  %s3231_s1 = inlined_call_operand.vmem [shape: bf16[16,8], index: 1, kind: input, shape index: {}]   ;;  %s3232_s2 = inlined_call_operand.vmem [shape: f32[1,8], index: 2, kind: input, shape index: {}]   ;;  %s3233_s3 = inlined_call_operand.vmem [shape: bf16[2,272,8], index: 3, kind: output, shape index: {}]  }
   0x1 LB: > { %s2065_s13 = sadd.s32 4294967295, %s2659_s12   ;;  %p2069_p0 = scmp.ge.s32.totalorder %s2659_s12, 1  ;;  %s2659_s12 = sphi %s2683_s12, %s13_s12  }
   0x2   : > { %p137_p1 = scmp.lt.s32.totalorder %s2659_s12, 3 }
   0x4   : > { %p138_p2 = pnand %p2069_p0, %p137_p1 }
   0x5   : > { %v2614_v0 = vld [vmem:[%s3231_s1] ss:$0 sps:$4 sm:$0xcc] (!%p138_p2)   ;;  %v2661_v1 = vmov (!%p138_p2), 0.0   ;;  %vm494_vm0 = vcmask (!%p138_p2), 1041408   ;;  %p161_p3 = scmp.lt.s32.totalorder (!%p138_p2), %s2065_s13, 1 }
   0x6   : > { %141 = sbr.rel (%p138_p2) target bundleno = 515 (0x203), region = 32  ;;  %2322 = vmatprep.subr.bf16.mxu0 (!%p138_p2), %v2661_v1  ;;  %2392 = vmatprep.subr.bf16.mxu1 (!%p138_p2), %v2661_v1  ;;  %v206_v2 = vld [vmem:[%s3231_s1] sm:$0x3] (!%p138_p2)  ;;  %v441_v3 = vrot.slane (!%p138_p2), %v2614_v0, 2  ;;  %vm2662_vm1 = vmmov (!%p138_p2), 0   ;;  %vm442_vm2 = vcmask (!%p138_p2), 31744  }
   0x7   : > { %v702_v4 = vsel (!%p138_p2), %vm494_vm0, %v206_v2, 0  ;;  %2394 = vmatprep.mubr.msk.bf16.mxu1 (!%p138_p2), %vm2662_vm1, %v2661_v1  ;;  %2324 = vmatprep.mubr.msk.bf16.mxu0 (!%p138_p2), %vm2662_vm1, %v2661_v1  ;;  %v2617_v6 = vld [vmem:[%s3231_s1 + $0x4] ss:$0 sps:$4 sm:$0xcc] (!%p138_p2)   ;;  %vm297_vm3 = vsmask.f32 (!%p138_p2), 7424 }
   0x8   : > { %2393 = vmatpush3.bf16.msra.mxu1 (!%p138_p2), %v702_v4  ;;  %v496_v5 = vsel (!%p138_p2), %vm494_vm0, %v441_v3, 0  ;;  %v1438_v7 = vrot.slane (!%p138_p2), %v2617_v6, 2  ;;  %v908_v14 = vld [vmem:[%s3231_s1 + $0x4] sm:$0x3] (!%p138_p2)  ;;  %vm1399_vm4 = vcmask (!%p138_p2), 1046528   ;;  %vm1975_vm6 = vcmask (!%p138_p2), 60416  }
   0x9   : > { %2532 = vmatprep.subr.bf16.mxu1 (!%p138_p2), %v2661_v1  ;;  %2323 = vmatpush3.bf16.msra.mxu0 (!%p138_p2), %v496_v5  ;;  %v1189_v21 = vsel (!%p138_p2), %vm494_vm0, %v908_v14, 0 }
   0xa   : > { %2462 = vmatprep.subr.bf16.mxu0 (!%p138_p2), %v2661_v1  ;;  %v1491_v9 = vsel (!%p138_p2), %vm494_vm0, %v1438_v7, 0 }
   0xd   : > { %s3235_s13 = smov (!%p161_p3, %s2065_s13), 1 }
   0xe   : > { %s2602_s20 = smul.u32 156, %s3235_s13 }
   0xf   : > { %s2603_s28 = smul.u32 136, %s3235_s13 }
  0x10   : > { %s2716_s23 = scalar_lea.vmem %s3230_s0, %s2602_s20 }
  0x11   : > { %v2615_v8 = vld [vmem:[%s2716_s23] sm:$0xff]   ;;  %v2616_v10 = vld [vmem:[%s2716_s23 + $0x8] sm:$0xff]   ;;  %v2618_v15 = vld [vmem:[%s2716_s23 + $0x10] sm:$0xff]   ;;  %s3093_s4 = scalar_lea.vmem %s3233_s3, %s2603_s28 }
  0x12   : > { %2395 = vmatmul.mubr.msk.bf16.vlgmr.msra.gmra.mrb[0].mxu1 %vm442_vm2, %v2615_v8  ;;  %v299_v11 = vshrl.u32 %v2615_v8, 16  ;;  %v301_v12 = vshll.u32 %v2615_v8, 16  ;;  %v306_v13 = vshll.u32 %v2616_v10, 16  ;;  %v310_v19 = vshrl.u32 %v2616_v10, 16  ;;  %v2619_v25 = vld [vmem:[%s2716_s23 + $0x18] sm:$0xff]   ;;  %v2620_v31 = vld [vmem:[%s2716_s23 + $0x20] sm:$0xff]  }
  0x13   : > { %2533 = vmatpush3.bf16.msra.mxu1 %v1491_v9  ;;  %2398 = vmatprep.mubr.msk.bf16.mxu1 %vm2662_vm1, %v2661_v1  ;;  %v314_v20 = vshll.u32 %v2618_v15, 16  ;;  %v318_v27 = vshrl.u32 %v2618_v15, 16  ;;  %v322_v28 = vshll.u32 %v2619_v25, 16  ;;  %v326_v33 = vshrl.u32 %v2619_v25, 16  ;;  %v2621_v37 = vld [vmem:[%s2716_s23 + $0x28] sm:$0xff]   ;;  %v2622_v43 = vld [vmem:[%s2716_s23 + $0x30] sm:$0xff]  }
  0x14   : > { %v303_v16 = vrot.slane %v301_v12, 1  ;;  %v308_v17 = vrot.slane %v306_v13, 1  ;;  %v330_v34 = vshll.u32 %v2620_v31, 16  ;;  %v334_v39 = vshrl.u32 %v2620_v31, 16  ;;  %v2623_v49 = vld [vmem:[%s2716_s23 + $0x38] sm:$0xff]   ;;  %v2624_v55 = vld [vmem:[%s2716_s23 + $0x40] sm:$0xff]  }
  0x15   : > { %v316_v24 = vrot.slane %v314_v20, 1  ;;  %v324_v30 = vrot.slane %v322_v28, 1  ;;  %v338_v40 = vshll.u32 %v2621_v37, 16  ;;  %v342_v45 = vshrl.u32 %v2621_v37, 16  ;;  %v2625_v61 = vld [vmem:[%s2716_s23 + $0x48] sm:$0xff]   ;;  %v2626_v4 = vld [vmem:[%s2716_s23 + $0x50] sm:$0xff]  }
  0x16   : > { %v304_v18 = vor.u32 %v303_v16, %v299_v11  ;;  %v312_v23 = vor.u32 %v310_v19, %v308_v17  ;;  %v332_v36 = vrot.slane %v330_v34, 1  ;;  %v346_v46 = vshll.u32 %v2622_v43, 16  ;;  %v2628_v16 = vld [vmem:[%s2716_s23 + $0x60] sm:$0xff]   ;;  %v2630_v28 = vld [vmem:[%s2716_s23 + $0x70] sm:$0xff]   ;;  %v2631_v34 = vld [vmem:[%s2716_s23 + $0x78] sm:$0xff]  }
  0x17   : > { %v320_v29 = vor.u32 %v318_v27, %v316_v24  ;;  %v328_v35 = vor.u32 %v326_v33, %v324_v30  ;;  %v340_v42 = vrot.slane %v338_v40, 1  ;;  %v350_v51 = vshrl.u32 %v2622_v43, 16  ;;  %v2632_v40 = vld [vmem:[%s2716_s23 + $0x80] sm:$0xff]  }
  0x18   : > { %v309_v22 = vsel %vm297_vm3, %v304_v18, %v308_v17  ;;  %v317_v26 = vsel %vm297_vm3, %v312_v23, %v316_v24  ;;  %v336_v41 = vor.u32 %v334_v39, %v332_v36  ;;  %v348_v48 = vrot.slane %v346_v46, 1  ;;  %v2633_v46 = vld [vmem:[%s2716_s23 + $0x88] ss:$0 sps:$4 sm:$0x11]  }
  0x19   : > { %2325 = vmatmul.mubr.msk.bf16.vlgmr.msra.gmra.mrb[0].mxu0 %vm442_vm2, %v309_v22  ;;  %v325_v32 = vsel %vm297_vm3, %v320_v29, %v324_v30  ;;  %v333_v38 = vsel %vm297_vm3, %v328_v35, %v332_v36  ;;  %v344_v47 = vor.u32 %v342_v45, %v340_v42  ;;  %v354_v52 = vshll.u32 %v2623_v49, 16  ;;  %v2629_v22 = vld [vmem:[%s2716_s23 + $0x68] sm:$0xff]  }
  0x1a   : > { %2463 = vmatpush3.bf16.msra.mxu0 %v1189_v21  ;;  %2328 = vmatprep.mubr.msk.bf16.mxu0 %vm2662_vm1, %v2661_v1  ;;  %v341_v44 = vsel %vm297_vm3, %v336_v41, %v340_v42  ;;  %v352_v53 = vor.u32 %v350_v51, %v348_v48  ;;  %v358_v57 = vshrl.u32 %v2623_v49, 16  ;;  %v362_v58 = vshll.u32 %v2624_v55, 16 }
  0x1b   : > { %2399 = vmatmul.mubr.msk.bf16.gmra.mrb[4].mxu1 %vm442_vm2, %v2616_v10  ;;  %v349_v50 = vsel %vm297_vm3, %v344_v47, %v348_v48  ;;  %v356_v54 = vrot.slane %v354_v52, 1  ;;  %v366_v63 = vshrl.u32 %v2624_v55, 16  ;;  %v370_v0 = vshll.u32 %v2625_v61, 16  ;;  %v2627_v10 = vld [vmem:[%s2716_s23 + $0x58] sm:$0xff]   ;;  %v873_v47 = vld [vmem:[%s2716_s23 + $0x8] sm:$0xf] }
  0x1c   : > { %2402 = vmatprep.mubr.msk.bf16.mxu1 %vm2662_vm1, %v2661_v1  ;;  %v364_v60 = vrot.slane %v362_v58, 1  ;;  %v374_v6 = vshrl.u32 %v2625_v61, 16  ;;  %v378_v7 = vshll.u32 %v2626_v4, 16  ;;  %v382_v12 = vshrl.u32 %v2626_v4, 16  ;;  %v874_v48 = vld [vmem:[%s2716_s23 + $0xc] sm:$0xf] }
  0x1d   : > { %v357_v56 = vsel %vm297_vm3, %v352_v53, %v356_v54  ;;  %v360_v59 = vor.u32 %v358_v57, %v356_v54  ;;  %v372_v3 = vrot.slane %v370_v0, 1  ;;  %v386_v13 = vshll.u32 %v2627_v10, 16  ;;  %v2635_v54 = vld [vmem:[%s2716_s23 + $0x10] sm:$0xff]  }
  0x1e   : > { %v368_v2 = vor.u32 %v366_v63, %v364_v60  ;;  %v380_v9 = vrot.slane %v378_v7, 1  ;;  %v390_v18 = vshrl.u32 %v2627_v10, 16  ;;  %v394_v19 = vshll.u32 %v2628_v16, 16 }
  0x1f   : > { %v365_v62 = vsel %vm297_vm3, %v360_v59, %v364_v60  ;;  %v376_v8 = vor.u32 %v374_v6, %v372_v3  ;;  %v398_v24 = vshrl.u32 %v2628_v16, 16  ;;  %v406_v30 = vshrl.u32 %v2629_v22, 16 }
  0x20   : > { %v373_v5 = vsel %vm297_vm3, %v368_v2, %v372_v3  ;;  %v384_v14 = vor.u32 %v382_v12, %v380_v9  ;;  %v396_v21 = vrot.slane %v394_v19, 1  ;;  %v414_v36 = vshrl.u32 %v2630_v28, 16  ;;  %v2637_v3 = vld [vmem:[%s2716_s23 + $0x18] sm:$0xff]   ;;  %v2639_v19 = vld [vmem:[%s2716_s23 + $0x28] sm:$0xff]  }
  0x21   : > { %2329 = vmatmul.mubr.msk.bf16.gmra.mrb[4].mxu0 %vm442_vm2, %v317_v26  ;;  %v381_v11 = vsel %vm297_vm3, %v376_v8, %v380_v9  ;;  %v422_v42 = vshrl.u32 %v2631_v34, 16  ;;  %v430_v51 = vshrl.u32 %v2632_v40, 16  ;;  %v434_v52 = vshll.u32 %v2633_v46, 16 }
  0x22   : > { %2332 = vmatprep.mubr.msk.bf16.mxu0 %vm2662_vm1, %v2661_v1  ;;  %v400_v26 = vor.u32 %v398_v24, %v396_v21  ;;  %v2125_v53 = vcombine.low %v873_v47, %v874_v48  ;;  %v1401_v60 = vrot.slane %v2635_v54, 1  ;;  %v1005_v0 = vshll.u32 %v2635_v54, 16 }
  0x23   : > { %2403 = vmatmul.mubr.msk.bf16.gmra.mrb[8].mxu1 %vm442_vm2, %v2618_v15  ;;  %v388_v15 = vrot.slane %v386_v13, 1  ;;  %v436_v57 = vrot.slane %v434_v52, 1  ;;  %v1403_v6 = vrot.slane %v2637_v3, 1  ;;  %v1009_v8 = vshrl.u32 %v2635_v54, 16 }
  0x24   : > { %2406 = vmatprep.mubr.msk.bf16.mxu1 %vm2662_vm1, %v2661_v1  ;;  %v1000_v58 = vshll.u32 %v2125_v53, 16  ;;  %v1013_v9 = vshll.u32 %v2637_v3, 16 }
  0x25   : > { %v389_v17 = vsel %vm297_vm3, %v384_v14, %v388_v15  ;;  %v392_v20 = vor.u32 %v390_v18, %v388_v15 }
  0x26   : > { %v1002_v63 = vrot.slane %v1000_v58, 1  ;;  %v1015_v13 = vrot.slane %v1013_v9, 1 }
  0x27   : > { %v397_v23 = vsel %vm297_vm3, %v392_v20, %v396_v21 }
  0x29   : > { %2333 = vmatmul.mubr.msk.bf16.gmra.mrb[8].mxu0 %vm442_vm2, %v325_v32 }
  0x2a   : > { %2336 = vmatprep.mubr.msk.bf16.mxu0 %vm2662_vm1, %v2661_v1 }
  0x2b   : > { %2407 = vmatmul.mubr.msk.bf16.gmra.mrb[12].mxu1 %vm442_vm2, %v2619_v25  ;;  %v402_v25 = vshll.u32 %v2629_v22, 16 }
  0x2c   : > { %2410 = vmatprep.mubr.msk.bf16.mxu1 %vm2662_vm1, %v2661_v1 }
  0x2d   : > { %v404_v27 = vrot.slane %v402_v25, 1  ;;  %v1029_v25 = vshll.u32 %v2639_v19, 16 }
  0x2f   : > { %v405_v29 = vsel %vm297_vm3, %v400_v26, %v404_v27  ;;  %v408_v32 = vor.u32 %v406_v30, %v404_v27  ;;  %v2640_v27 = vld [vmem:[%s2716_s23 + $0x30] sm:$0xff]  }
  0x30   : > { %v1409_v30 = vrot.slane %v2640_v27, 1 }
  0x31   : > { %2337 = vmatmul.mubr.msk.bf16.gmra.mrb[12].mxu0 %vm442_vm2, %v333_v38 }
  0x32   : > { %2340 = vmatprep.mubr.msk.bf16.mxu0 %vm2662_vm1, %v2661_v1 }
  0x33   : > { %2411 = vmatmul.mubr.msk.bf16.gmra.mrb[16].mxu1 %vm442_vm2, %v2620_v31  ;;  %v410_v31 = vshll.u32 %v2630_v28, 16 }
  0x34   : > { %2414 = vmatprep.mubr.msk.bf16.mxu1 %vm2662_vm1, %v2661_v1 }
  0x35   : > { %v412_v33 = vrot.slane %v410_v31, 1 }
  0x37   : > { %v413_v35 = vsel %vm297_vm3, %v408_v32, %v412_v33  ;;  %v416_v38 = vor.u32 %v414_v36, %v412_v33  ;;  %v1033_v32 = vshrl.u32 %v2639_v19, 16  ;;  %v1037_v33 = vshll.u32 %v2640_v27, 16 }
  0x39   : > { %2341 = vmatmul.mubr.msk.bf16.gmra.mrb[16].mxu0 %vm442_vm2, %v341_v44 }
  0x3a   : > { %2344 = vmatprep.mubr.msk.bf16.mxu0 %vm2662_vm1, %v2661_v1 }
  0x3b   : > { %2415 = vmatmul.mubr.msk.bf16.gmra.mrb[20].mxu1 %vm442_vm2, %v2621_v37  ;;  %v418_v37 = vshll.u32 %v2631_v34, 16 }
  0x3c   : > { %2418 = vmatprep.mubr.msk.bf16.mxu1 %vm2662_vm1, %v2661_v1 }
  0x3d   : > { %v420_v39 = vrot.slane %v418_v37, 1  ;;  %v1039_v37 = vrot.slane %v1037_v33, 1 }
  0x3f   : > { %v421_v41 = vsel %vm297_vm3, %v416_v38, %v420_v39  ;;  %v424_v44 = vor.u32 %v422_v42, %v420_v39 }
  0x41   : > { %2345 = vmatmul.mubr.msk.bf16.gmra.mrb[20].mxu0 %vm442_vm2, %v349_v50 }
  0x42   : > { %2348 = vmatprep.mubr.msk.bf16.mxu0 %vm2662_vm1, %v2661_v1 }
  0x43   : > { %2419 = vmatmul.mubr.msk.bf16.gmra.mrb[24].mxu1 %vm442_vm2, %v2622_v43  ;;  %v426_v43 = vshll.u32 %v2632_v40, 16 }
  0x44   : > { %2422 = vmatprep.mubr.msk.bf16.mxu1 %vm2662_vm1, %v2661_v1 }
  0x45   : > { %v428_v45 = vrot.slane %v426_v43, 1  ;;  %v2642_v43 = vld [vmem:[%s2716_s23 + $0x40] sm:$0xff]  }
  0x46   : > { %v1413_v46 = vrot.slane %v2642_v43, 1 }
  0x47   : > { %v429_v50 = vsel %vm297_vm3, %v424_v44, %v428_v45 }
  0x49   : > { %2349 = vmatmul.mubr.msk.bf16.gmra.mrb[24].mxu0 %vm442_vm2, %v357_v56  ;;  %v432_v56 = vor.u32 %v430_v51, %v428_v45  ;;  %v2643_v51 = vld [vmem:[%s2716_s23 + $0x48] sm:$0xff]  }
  0x4a   : > { %2352 = vmatprep.mubr.msk.bf16.mxu0 %vm2662_vm1, %v2661_v1  ;;  %v1415_v54 = vrot.slane %v2643_v51, 1 }
  0x4b   : > { %2423 = vmatmul.mubr.msk.bf16.gmra.mrb[28].mxu1 %vm442_vm2, %v2623_v49  ;;  %v1394_v49 = vld [vmem:[%s2716_s23 + $0x8] sm:$0xe] }
  0x4c   : > { %2426 = vmatprep.mubr.msk.bf16.mxu1 %vm2662_vm1, %v2661_v1  ;;  %v1416_v58 = vsel %vm1399_vm4, %v1413_v46, %v1415_v54 }
  0x51   : > { %2353 = vmatmul.mubr.msk.bf16.gmra.mrb[28].mxu0 %vm442_vm2, %v365_v62  ;;  %v998_v62 = vshrl.u32 %v2125_v53, 16 }
  0x52   : > { %2356 = vmatprep.mubr.msk.bf16.mxu0 %vm2662_vm1, %v2661_v1 }
  0x53   : > { %2427 = vmatmul.mubr.msk.bf16.gmra.mrb[32].mxu1 %vm442_vm2, %v2624_v55  ;;  %v2160_v55 = vcombine.low %v1394_v49, %v874_v48  ;;  %v1053_v49 = vshll.u32 %v2642_v43, 16 }
  0x54   : > { %2430 = vmatprep.mubr.msk.bf16.mxu1 %vm2662_vm1, %v2661_v1 }
  0x55   : > { %v1400_v59 = vrot.slane %v2160_v55, 1  ;;  %v1055_v53 = vrot.slane %v1053_v49, 1 }
  0x57   : > { %v1402_v2 = vsel %vm1399_vm4, %v1400_v59, %v1401_v60  ;;  %v2644_v59 = vld [vmem:[%s2716_s23 + $0x50] sm:$0xff]  }
  0x58   : > { %v1073_v9 = vshrl.u32 %v2644_v59, 16 }
  0x59   : > { %2357 = vmatmul.mubr.msk.bf16.gmra.mrb[32].mxu0 %vm442_vm2, %v373_v5  ;;  %v1007_v5 = vrot.slane %v1005_v0, 1  ;;  %v1065_v0 = vshrl.u32 %v2643_v51, 16 }
  0x5a   : > { %2360 = vmatprep.mubr.msk.bf16.mxu0 %vm2662_vm1, %v2661_v1 }
  0x5b   : > { %2431 = vmatmul.mubr.msk.bf16.gmra.mrb[36].mxu1 %vm442_vm2, %v2625_v61  ;;  %v437_v61 = vsel %vm297_vm3, %v432_v56, %v436_v57  ;;  %v1011_v12 = vor.u32 %v1009_v8, %v1007_v5  ;;  %v1057_v56 = vshrl.u32 %v2642_v43, 16  ;;  %v1061_v57 = vshll.u32 %v2643_v51, 16 }
  0x5c   : > { %2434 = vmatprep.mubr.msk.bf16.mxu1 %vm2662_vm1, %v2661_v1 }
  0x5d   : > { %v1016_v15 = vsel %vm297_vm3, %v1011_v12, %v1015_v13  ;;  %v2646_v12 = vld [vmem:[%s2716_s23 + $0x60] sm:$0xff]  }
  0x61   : > { %2361 = vmatmul.mubr.msk.bf16.gmra.mrb[36].mxu0 %vm442_vm2, %v381_v11  ;;  %v2638_v11 = vld [vmem:[%s2716_s23 + $0x20] sm:$0xff]  }
  0x62   : > { %2364 = vmatprep.mubr.msk.bf16.mxu0 %vm2662_vm1, %v2661_v1  ;;  %v1405_v14 = vrot.slane %v2638_v11, 1  ;;  %v1025_v24 = vshrl.u32 %v2638_v11, 16 }
  0x63   : > { %2435 = vmatmul.mubr.msk.bf16.gmra.mrb[40].mxu1 %vm442_vm2, %v2626_v4  ;;  %v1003_v4 = vor.u32 %v1002_v63, %v998_v62  ;;  %v1417_v62 = vrot.slane %v2644_v59, 1 }
  0x64   : > { %2438 = vmatprep.mubr.msk.bf16.mxu1 %vm2662_vm1, %v2661_v1  ;;  %v1406_v18 = vsel %vm1399_vm4, %v1403_v6, %v1405_v14 }
  0x65   : > { %v1008_v7 = vsel %vm297_vm3, %v1003_v4, %v1007_v5  ;;  %v2645_v4 = vld [vmem:[%s2716_s23 + $0x58] sm:$0xff]  }
  0x69   : > { %2365 = vmatmul.mubr.msk.bf16.gmra.mrb[40].mxu0 %vm442_vm2, %v389_v17  ;;  %v1021_v17 = vshll.u32 %v2638_v11, 16 }
  0x6a   : > { %2368 = vmatprep.mubr.msk.bf16.mxu0 %vm2662_vm1, %v2661_v1 }
  0x6b   : > { %2439 = vmatmul.mubr.msk.bf16.gmra.mrb[44].mxu1 %vm442_vm2, %v2627_v10  ;;  %v1404_v10 = vsel %vm1399_vm4, %v1401_v60, %v1403_v6  ;;  %v1023_v21 = vrot.slane %v1021_v17, 1  ;;  %v1059_v60 = vor.u32 %v1057_v56, %v1055_v53 }
  0x6c   : > { %2442 = vmatprep.mubr.msk.bf16.mxu1 %vm2662_vm1, %v2661_v1 }
  0x71   : > { %2369 = vmatmul.mubr.msk.bf16.gmra.mrb[44].mxu0 %vm442_vm2, %v397_v23 }
  0x72   : > { %2372 = vmatprep.mubr.msk.bf16.mxu0 %vm2662_vm1, %v2661_v1 }
  0x73   : > { %2443 = vmatmul.mubr.msk.bf16.gmra.mrb[48].mxu1 %vm442_vm2, %v2628_v16  ;;  %v1017_v16 = vshrl.u32 %v2637_v3, 16  ;;  %v1418_v3 = vsel %vm1399_vm4, %v1415_v54, %v1417_v62 }
  0x74   : > { %2446 = vmatprep.mubr.msk.bf16.mxu1 %vm2662_vm1, %v2661_v1 }
  0x75   : > { %v1019_v20 = vor.u32 %v1017_v16, %v1015_v13 }
  0x77   : > { %v1024_v23 = vsel %vm297_vm3, %v1019_v20, %v1023_v21  ;;  %v1085_v20 = vshll.u32 %v2646_v12, 16 }
  0x79   : > { %2373 = vmatmul.mubr.msk.bf16.gmra.mrb[48].mxu0 %vm442_vm2, %v405_v29  ;;  %v1031_v29 = vrot.slane %v1029_v25, 1 }
  0x7a   : > { %2376 = vmatprep.mubr.msk.bf16.mxu0 %vm2662_vm1, %v2661_v1 }
  0x7b   : > { %2447 = vmatmul.mubr.msk.bf16.gmra.mrb[52].mxu1 %vm442_vm2, %v2629_v22  ;;  %v1407_v22 = vrot.slane %v2639_v19, 1  ;;  %v1035_v36 = vor.u32 %v1033_v32, %v1031_v29  ;;  %v1081_v19 = vshrl.u32 %v2645_v4, 16 }
  0x7c   : > { %2450 = vmatprep.mubr.msk.bf16.mxu1 %vm2662_vm1, %v2661_v1 }
  0x7d   : > { %v1408_v26 = vsel %vm1399_vm4, %v1405_v14, %v1407_v22  ;;  %v1040_v39 = vsel %vm297_vm3, %v1035_v36, %v1039_v37 }
  0x81   : > { %2377 = vmatmul.mubr.msk.bf16.gmra.mrb[52].mxu0 %vm442_vm2, %v413_v35  ;;  %v2641_v35 = vld [vmem:[%s2716_s23 + $0x38] sm:$0xff]  }
  0x82   : > { %2380 = vmatprep.mubr.msk.bf16.mxu0 %vm2662_vm1, %v2661_v1  ;;  %v1411_v38 = vrot.slane %v2641_v35, 1  ;;  %v1049_v48 = vshrl.u32 %v2641_v35, 16 }
  0x83   : > { %2451 = vmatmul.mubr.msk.bf16.gmra.mrb[56].mxu1 %vm442_vm2, %v2630_v28  ;;  %v1027_v28 = vor.u32 %v1025_v24, %v1023_v21  ;;  %v2647_v24 = vld [vmem:[%s2716_s23 + $0x68] sm:$0xff]  }
  0x84   : > { %2454 = vmatprep.mubr.msk.bf16.mxu1 %vm2662_vm1, %v2661_v1  ;;  %v1412_v42 = vsel %vm1399_vm4, %v1409_v30, %v1411_v38 }
  0x85   : > { %v1032_v31 = vsel %vm297_vm3, %v1027_v28, %v1031_v29  ;;  %v1423_v28 = vrot.slane %v2647_v24, 1 }
  0x89   : > { %2381 = vmatmul.mubr.msk.bf16.gmra.mrb[56].mxu0 %vm442_vm2, %v421_v41  ;;  %v1045_v41 = vshll.u32 %v2641_v35, 16  ;;  %v1093_v35 = vshll.u32 %v2647_v24, 16 }
  0x8a   : > { %2384 = vmatprep.mubr.msk.bf16.mxu0 %vm2662_vm1, %v2661_v1 }
  0x8b   : > { %2455 = vmatmul.mubr.msk.bf16.gmra.mrb[60].mxu1 %vm442_vm2, %v2631_v34  ;;  %v1410_v34 = vsel %vm1399_vm4, %v1407_v22, %v1409_v30  ;;  %v1047_v45 = vrot.slane %v1045_v41, 1  ;;  %v2648_v41 = vld [vmem:[%s2716_s23 + $0x70] sm:$0xff]  }
  0x8c   : > { %2458 = vmatprep.mubr.msk.bf16.mxu1 %vm2662_vm1, %v2661_v1 }
  0x8d   : > { %v1051_v52 = vor.u32 %v1049_v48, %v1047_v45 }
  0x8f   : > { %v1056_v55 = vsel %vm297_vm3, %v1051_v52, %v1055_v53  ;;  %v1097_v52 = vshrl.u32 %v2647_v24, 16  ;;  %v1101_v53 = vshll.u32 %v2648_v41, 16 }
  0x91   : > { %2385 = vmatmul.mubr.msk.bf16.gmra.mrb[60].mxu0 %vm442_vm2, %v429_v50  ;;  %v1414_v50 = vsel %vm1399_vm4, %v1411_v38, %v1413_v46  ;;  %v1425_v46 = vrot.slane %v2648_v41, 1 }
  0x92   : > { %2388 = vmatprep.mubr.msk.bf16.mxu0 %vm2662_vm1, %v2661_v1 }
  0x93   : > { %2459 = vmatmul.mubr.msk.bf16.gmra.mrb[64].mxu1 %vm442_vm2, %v2632_v40  ;;  %v1041_v40 = vshrl.u32 %v2640_v27, 16 }
  0x94   : > { %2534 = vmatprep.mubr.msk.bf16.mxu1 %vm2662_vm1, %v2661_v1 }
  0x95   : > { %v1043_v44 = vor.u32 %v1041_v40, %v1039_v37 }
  0x97   : > { %v1048_v47 = vsel %vm297_vm3, %v1043_v44, %v1047_v45  ;;  %v1095_v44 = vrot.slane %v1093_v35, 1 }
  0x99   : > { %2389 = vmatmul.mubr.msk.bf16.gmra.mrb[64].mxu0 %vm442_vm2, %v437_v61  ;;  %v1063_v61 = vrot.slane %v1061_v57, 1 }
  0x9a   : > { %2464 = vmatprep.mubr.msk.bf16.mxu0 %vm2662_vm1, %v2661_v1 }
  0x9b   : > { %2535 = vmatmul.mubr.msk.bf16.vlgmr.msra.gmra.mrb[68].mxu1 %vm442_vm2, %v1402_v2  ;;  %v1064_v63 = vsel %vm297_vm3, %v1059_v60, %v1063_v61  ;;  %v1069_v2 = vshll.u32 %v2644_v59, 16  ;;  %v1067_v5 = vor.u32 %v1065_v0, %v1063_v61  ;;  %v2649_v59 = vld [vmem:[%s2716_s23 + $0x78] sm:$0xff]   ;;  %v1099_v61 = vor.u32 %v1097_v52, %v1095_v44 }
  0x9c   : > { %2538 = vmatprep.mubr.msk.bf16.mxu1 %vm2662_vm1, %v2661_v1  ;;  %v1427_v0 = vrot.slane %v2649_v59, 1 }
  0x9d   : > { %v1071_v6 = vrot.slane %v1069_v2, 1 }
  0x9f   : > { %v1072_v8 = vsel %vm297_vm3, %v1067_v5, %v1071_v6  ;;  %v1075_v13 = vor.u32 %v1073_v9, %v1071_v6 }
  0xa1   : > { %2465 = vmatmul.mubr.msk.bf16.vlgmr.msra.gmra.mrb[68].mxu0 %vm442_vm2, %v1008_v7  ;;  %v1419_v7 = vrot.slane %v2645_v4, 1 }
  0xa2   : > { %2468 = vmatprep.mubr.msk.bf16.mxu0 %vm2662_vm1, %v2661_v1 }
  0xa3   : > { %2539 = vmatmul.mubr.msk.bf16.gmra.mrb[72].mxu1 %vm442_vm2, %v1404_v10  ;;  %v1077_v10 = vshll.u32 %v2645_v4, 16  ;;  %v1420_v11 = vsel %vm1399_vm4, %v1417_v62, %v1419_v7  ;;  %v1103_v62 = vrot.slane %v1101_v53, 1  ;;  %v2652_v53 = vld [vmem:[%s2716_s23 + $0x90] ss:$0 sps:$4 sm:$0x11]  }
  0xa4   : > { %2542 = vmatprep.mubr.msk.bf16.mxu1 %vm2662_vm1, %v2661_v1 }
  0xa5   : > { %v1079_v14 = vrot.slane %v1077_v10, 1  ;;  %v1104_v5 = vsel %vm297_vm3, %v1099_v61, %v1103_v62 }
  0xa7   : > { %v1080_v17 = vsel %vm297_vm3, %v1075_v13, %v1079_v14  ;;  %v1083_v25 = vor.u32 %v1081_v19, %v1079_v14  ;;  %v1428_v13 = vsel %vm1399_vm4, %v1425_v46, %v1427_v0  ;;  %v2650_v14 = vld [vmem:[%s2716_s23 + $0x80] sm:$0xff]  }
  0xa8   : > { %v1429_v19 = vrot.slane %v2650_v14, 1 }
  0xa9   : > { %2469 = vmatmul.mubr.msk.bf16.gmra.mrb[72].mxu0 %vm442_vm2, %v1016_v15  ;;  %v1421_v15 = vrot.slane %v2646_v12, 1 }
  0xaa   : > { %2472 = vmatprep.mubr.msk.bf16.mxu0 %vm2662_vm1, %v2661_v1 }
  0xab   : > { %2543 = vmatmul.mubr.msk.bf16.gmra.mrb[76].mxu1 %vm442_vm2, %v1406_v18  ;;  %v1424_v40 = vsel %vm1399_vm4, %v1421_v15, %v1423_v28 }
  0xac   : > { %2546 = vmatprep.mubr.msk.bf16.mxu1 %vm2662_vm1, %v2661_v1 }
  0xb1   : > { %2473 = vmatmul.mubr.msk.bf16.gmra.mrb[76].mxu0 %vm442_vm2, %v1024_v23  ;;  %v1422_v23 = vsel %vm1399_vm4, %v1419_v7, %v1421_v15  ;;  %v1105_v7 = vshrl.u32 %v2648_v41, 16 }
  0xb2   : > { %2476 = vmatprep.mubr.msk.bf16.mxu0 %vm2662_vm1, %v2661_v1 }
  0xb3   : > { %2547 = vmatmul.mubr.msk.bf16.gmra.mrb[80].mxu1 %vm442_vm2, %v1408_v26  ;;  %v1087_v26 = vrot.slane %v1085_v20, 1 }
  0xb4   : > { %2550 = vmatprep.mubr.msk.bf16.mxu1 %vm2662_vm1, %v2661_v1 }
  0xb5   : > { %v1088_v32 = vsel %vm297_vm3, %v1083_v25, %v1087_v26  ;;  %v1113_v25 = vshrl.u32 %v2649_v59, 16 }
  0xb9   : > { %2477 = vmatmul.mubr.msk.bf16.gmra.mrb[80].mxu0 %vm442_vm2, %v1032_v31 }
  0xba   : > { %2480 = vmatprep.mubr.msk.bf16.mxu0 %vm2662_vm1, %v2661_v1 }
  0xbb   : > { %2551 = vmatmul.mubr.msk.bf16.gmra.mrb[84].mxu1 %vm442_vm2, %v1410_v34  ;;  %v1089_v34 = vshrl.u32 %v2646_v12, 16 }
  0xbc   : > { %2554 = vmatprep.mubr.msk.bf16.mxu1 %vm2662_vm1, %v2661_v1 }
  0xbd   : > { %v1091_v43 = vor.u32 %v1089_v34, %v1087_v26  ;;  %v1117_v26 = vshll.u32 %v2650_v14, 16 }
  0xc1   : > { %2481 = vmatmul.mubr.msk.bf16.gmra.mrb[84].mxu0 %vm442_vm2, %v1040_v39 }
  0xc2   : > { %2484 = vmatprep.mubr.msk.bf16.mxu0 %vm2662_vm1, %v2661_v1 }
  0xc3   : > { %2555 = vmatmul.mubr.msk.bf16.gmra.mrb[88].mxu1 %vm442_vm2, %v1412_v42 }
  0xc4   : > { %2558 = vmatprep.mubr.msk.bf16.mxu1 %vm2662_vm1, %v2661_v1 }
  0xc9   : > { %2485 = vmatmul.mubr.msk.bf16.gmra.mrb[88].mxu0 %vm442_vm2, %v1048_v47 }
  0xca   : > { %2488 = vmatprep.mubr.msk.bf16.mxu0 %vm2662_vm1, %v2661_v1 }
  0xcb   : > { %2559 = vmatmul.mubr.msk.bf16.gmra.mrb[92].mxu1 %vm442_vm2, %v1414_v50  ;;  %v1096_v50 = vsel %vm297_vm3, %v1091_v43, %v1095_v44 }
  0xcc   : > { %2562 = vmatprep.mubr.msk.bf16.mxu1 %vm2662_vm1, %v2661_v1 }
  0xd1   : > { %2489 = vmatmul.mubr.msk.bf16.gmra.mrb[92].mxu0 %vm442_vm2, %v1056_v55 }
  0xd2   : > { %2492 = vmatprep.mubr.msk.bf16.mxu0 %vm2662_vm1, %v2661_v1 }
  0xd3   : > { %2563 = vmatmul.mubr.msk.bf16.gmra.mrb[96].mxu1 %vm442_vm2, %v1416_v58  ;;  %v1426_v58 = vsel %vm1399_vm4, %v1423_v28, %v1425_v46 }
  0xd4   : > { %2566 = vmatprep.mubr.msk.bf16.mxu1 %vm2662_vm1, %v2661_v1 }
  0xd9   : > { %2493 = vmatmul.mubr.msk.bf16.gmra.mrb[96].mxu0 %vm442_vm2, %v1064_v63 }
  0xda   : > { %2496 = vmatprep.mubr.msk.bf16.mxu0 %vm2662_vm1, %v2661_v1 }
  0xdb   : > { %2567 = vmatmul.mubr.msk.bf16.gmra.mrb[100].mxu1 %vm442_vm2, %v1418_v3 }
  0xdc   : > { %2570 = vmatprep.mubr.msk.bf16.mxu1 %vm2662_vm1, %v2661_v1 }
  0xe1   : > { %2497 = vmatmul.mubr.msk.bf16.gmra.mrb[100].mxu0 %vm442_vm2, %v1072_v8  ;;  %v1109_v8 = vshll.u32 %v2649_v59, 16  ;;  %v1433_v59 = vrot.slane %v2652_v53, 1 }
  0xe2   : > { %2500 = vmatprep.mubr.msk.bf16.mxu0 %vm2662_vm1, %v2661_v1 }
  0xe3   : > { %2571 = vmatmul.mubr.msk.bf16.gmra.mrb[104].mxu1 %vm442_vm2, %v1420_v11 }
  0xe4   : > { %2574 = vmatprep.mubr.msk.bf16.mxu1 %vm2662_vm1, %v2661_v1 }
  0xe5   : > { %v738_v16 = vpop.f32.mrb[0].mxu1 }
  0xe6   : > { %v2396_v18 = vpop.f32.mrb[1].mxu1 }
  0xe7   : > { %v741_v21 = vpop.f32.mrb[2].mxu1 }
  0xe8   : > { %v2397_v22 = vpop.f32.mrb[3].mxu1 }
  0xe9   : > { %2501 = vmatmul.mubr.msk.bf16.gmra.mrb[104].mxu0 %vm442_vm2, %v1080_v17  ;;  %v1111_v17 = vrot.slane %v1109_v8, 1 }
  0xea   : > { %2504 = vmatprep.mubr.msk.bf16.mxu0 %vm2662_vm1, %v2661_v1 }
  0xeb   : > { %2575 = vmatmul.mubr.msk.bf16.gmra.mrb[108].mxu1 %vm442_vm2, %v1422_v23  ;;  %v1115_v35 = vor.u32 %v1113_v25, %v1111_v17 }
  0xec   : > { %v532_v27 = vpop.f32.mrb[0].mxu0  ;;  %2578 = vmatprep.mubr.msk.bf16.mxu1 %vm2662_vm1, %v2661_v1 }
  0xed   : > { %v2959_v29 = vadd.f32 %v738_v16, %v532_v27  ;;  %v2326_v30 = vpop.f32.mrb[1].mxu0  ;;  %v1107_v16 = vor.u32 %v1105_v7, %v1103_v62 }
  0xee   : > { %v535_v31 = vpop.f32.mrb[2].mxu0  ;;  %v746_v33 = vpop.f32.mrb[4].mxu1 }
  0xef   : > { %v2962_v36 = vadd.f32 %v741_v21, %v535_v31  ;;  %v2327_v37 = vpop.f32.mrb[3].mxu0  ;;  %v2400_v38 = vpop.f32.mrb[5].mxu1  ;;  %v1112_v23 = vsel %vm297_vm3, %v1107_v16, %v1111_v17 }
  0xf0   : > { %v749_v39 = vpop.f32.mrb[6].mxu1  ;;  %v1119_v37 = vrot.slane %v1117_v26, 1 }
  0xf1   : > { %2505 = vmatmul.mubr.msk.bf16.gmra.mrb[108].mxu0 %vm442_vm2, %v1088_v32  ;;  %v2401_v42 = vpop.f32.mrb[7].mxu1  ;;  %v1430_v32 = vsel %vm1399_vm4, %v1427_v0, %v1429_v19 }
  0xf2   : > { %2508 = vmatprep.mubr.msk.bf16.mxu0 %vm2662_vm1, %v2661_v1  ;;  %v1120_v43 = vsel %vm297_vm3, %v1115_v35, %v1119_v37 }
  0xf3   : > { %2579 = vmatmul.mubr.msk.bf16.gmra.mrb[112].mxu1 %vm442_vm2, %v1424_v40 }
  0xf4   : > { %v540_v45 = vpop.f32.mrb[4].mxu0  ;;  %2582 = vmatprep.mubr.msk.bf16.mxu1 %vm2662_vm1, %v2661_v1 }
  0xf5   : > { %v2972_v47 = vadd.f32 %v746_v33, %v540_v45  ;;  %v2330_v48 = vpop.f32.mrb[5].mxu0  ;;  %v2651_v33 = vld [vmem:[%s2716_s23 + $0x88] sm:$0xff]   ;;  %v1121_v45 = vshrl.u32 %v2650_v14, 16 }
  0xf6   : > { %v543_v49 = vpop.f32.mrb[6].mxu0  ;;  %v754_v51 = vpop.f32.mrb[8].mxu1  ;;  %v1125_v46 = vshll.u32 %v2651_v33, 16 }
  0xf7   : > { %v2975_v54 = vadd.f32 %v749_v39, %v543_v49  ;;  %v2331_v55 = vpop.f32.mrb[7].mxu0  ;;  %v2404_v56 = vpop.f32.mrb[9].mxu1  ;;  %v1431_v39 = vrot.slane %v2651_v33, 1 }
  0xf8   : > { %v757_v57 = vpop.f32.mrb[10].mxu1  ;;  %v1123_v56 = vor.u32 %v1121_v45, %v1119_v37 }
  0xf9   : > { %2509 = vmatmul.mubr.msk.bf16.gmra.mrb[112].mxu0 %vm442_vm2, %v1096_v50  ;;  %v2405_v60 = vpop.f32.mrb[11].mxu1  ;;  %v1432_v52 = vsel %vm1399_vm4, %v1429_v19, %v1431_v39 }
  0xfa   : > { %2512 = vmatprep.mubr.msk.bf16.mxu0 %vm2662_vm1, %v2661_v1 }
  0xfb   : > { %2583 = vmatmul.mubr.msk.bf16.gmra.mrb[116].mxu1 %vm442_vm2, %v1426_v58 }
  0xfc   : > { %v548_v63 = vpop.f32.mrb[8].mxu0  ;;  %2586 = vmatprep.mubr.msk.bf16.mxu1 %vm2662_vm1, %v2661_v1 }
  0xfd   : > { %v2985_v2 = vadd.f32 %v754_v51, %v548_v63  ;;  %v2334_v3 = vpop.f32.mrb[9].mxu0 }
  0xfe   : > { %v551_v4 = vpop.f32.mrb[10].mxu0  ;;  %v762_v6 = vpop.f32.mrb[12].mxu1  ;;  %v1129_v3 = vshrl.u32 %v2651_v33, 16 }
  0xff   : > { %v2988_v9 = vadd.f32 %v757_v57, %v551_v4  ;;  %v2335_v10 = vpop.f32.mrb[11].mxu0  ;;  %v2408_v11 = vpop.f32.mrb[13].mxu1  ;;  %v1127_v57 = vrot.slane %v1125_v46, 1  ;;  %v1133_v4 = vshll.u32 %v2652_v53, 16 }
 0x100   : > { %v765_v12 = vpop.f32.mrb[14].mxu1  ;;  %v1434_v10 = vsel %vm1399_vm4, %v1431_v39, %v1433_v59 }
 0x101   : > { %2513 = vmatmul.mubr.msk.bf16.gmra.mrb[116].mxu0 %vm442_vm2, %v1104_v5  ;;  %v2409_v15 = vpop.f32.mrb[15].mxu1  ;;  %v1128_v63 = vsel %vm297_vm3, %v1123_v56, %v1127_v57 }
 0x102   : > { %2516 = vmatprep.mubr.msk.bf16.mxu0 %vm2662_vm1, %v2661_v1 }
 0x103   : > { %2587 = vmatmul.mubr.msk.bf16.gmra.mrb[120].mxu1 %vm442_vm2, %v1428_v13  ;;  %v1135_v13 = vrot.slane %v1133_v4, 1 }
 0x104   : > { %v556_v18 = vpop.f32.mrb[12].mxu0  ;;  %2590 = vmatprep.mubr.msk.bf16.mxu1 %vm2662_vm1, %v2661_v1 }
 0x105   : > { %v2998_v20 = vadd.f32 %v762_v6, %v556_v18  ;;  %v2338_v21 = vpop.f32.mrb[13].mxu0 }
 0x106   : > { %v559_v22 = vpop.f32.mrb[14].mxu0  ;;  %v770_v24 = vpop.f32.mrb[16].mxu1 }
 0x107   : > { %v3001_v27 = vadd.f32 %v765_v12, %v559_v22  ;;  %v2339_v28 = vpop.f32.mrb[15].mxu0  ;;  %v2412_v30 = vpop.f32.mrb[17].mxu1  ;;  %v1131_v12 = vor.u32 %v1129_v3, %v1127_v57 }
 0x108   : > { %v773_v31 = vpop.f32.mrb[18].mxu1 }
 0x109   : > { %2517 = vmatmul.mubr.msk.bf16.gmra.mrb[120].mxu0 %vm442_vm2, %v1112_v23  ;;  %v2413_v34 = vpop.f32.mrb[19].mxu1  ;;  %v1136_v18 = vsel %vm297_vm3, %v1131_v12, %v1135_v13 }
 0x10a   : > { %2520 = vmatprep.mubr.msk.bf16.mxu0 %vm2662_vm1, %v2661_v1 }
 0x10b   : > { %2591 = vmatmul.mubr.msk.bf16.gmra.mrb[124].mxu1 %vm442_vm2, %v1430_v32 }
 0x10c   : > { %v564_v38 = vpop.f32.mrb[16].mxu0  ;;  %2594 = vmatprep.mubr.msk.bf16.mxu1 %vm2662_vm1, %v2661_v1 }
 0x10d   : > { %v3011_v40 = vadd.f32 %v770_v24, %v564_v38  ;;  %v2342_v41 = vpop.f32.mrb[17].mxu0 }
 0x10e   : > { %v567_v42 = vpop.f32.mrb[18].mxu0  ;;  %v778_v44 = vpop.f32.mrb[20].mxu1 }
 0x10f   : > { %v3014_v48 = vadd.f32 %v773_v31, %v567_v42  ;;  %v2343_v49 = vpop.f32.mrb[19].mxu0  ;;  %v2416_v50 = vpop.f32.mrb[21].mxu1 }
 0x110   : > { %v781_v51 = vpop.f32.mrb[22].mxu1 }
 0x111   : > { %2521 = vmatmul.mubr.msk.bf16.gmra.mrb[124].mxu0 %vm442_vm2, %v1120_v43  ;;  %v2417_v55 = vpop.f32.mrb[23].mxu1 }
 0x112   : > { %2524 = vmatprep.mubr.msk.bf16.mxu0 %vm2662_vm1, %v2661_v1 }
 0x113   : > { %2595 = vmatmul.mubr.msk.bf16.gmra.mrb[128].mxu1 %vm442_vm2, %v1432_v52 }
 0x114   : > { %v572_v58 = vpop.f32.mrb[20].mxu0  ;;  %2598 = vmatprep.mubr.msk.bf16.mxu1 %vm2662_vm1, %v2661_v1 }
 0x115   : > { %v3024_v60 = vadd.f32 %v778_v44, %v572_v58  ;;  %v2346_v61 = vpop.f32.mrb[21].mxu0 }
 0x116   : > { %v575_v62 = vpop.f32.mrb[22].mxu0  ;;  %v786_v0 = vpop.f32.mrb[24].mxu1 }
 0x117   : > { %v3027_v5 = vadd.f32 %v781_v51, %v575_v62  ;;  %v2347_v6 = vpop.f32.mrb[23].mxu0  ;;  %v2420_v7 = vpop.f32.mrb[25].mxu1 }
 0x118   : > { %v789_v8 = vpop.f32.mrb[26].mxu1 }
 0x119   : > { %2525 = vmatmul.mubr.msk.bf16.gmra.mrb[128].mxu0 %vm442_vm2, %v1128_v63  ;;  %v2421_v11 = vpop.f32.mrb[27].mxu1 }
 0x11a   : > { %2528 = vmatprep.mubr.msk.bf16.mxu0 %vm2662_vm1, %v2661_v1 }
 0x11b   : > { %2599 = vmatmul.mubr.msk.bf16.gmra.mrb[132].mxu1 %vm442_vm2, %v1434_v10 }
 0x11c   : > { %v580_v14 = vpop.f32.mrb[24].mxu0 }
 0x11d   : > { %v3034_v15 = vadd.f32 %v786_v0, %v580_v14  ;;  %v2350_v16 = vpop.f32.mrb[25].mxu0 }
 0x11e   : > { %v583_v17 = vpop.f32.mrb[26].mxu0  ;;  %v794_v19 = vpop.f32.mrb[28].mxu1 }
 0x11f   : > { %v3037_v21 = vadd.f32 %v789_v8, %v583_v17  ;;  %v2351_v22 = vpop.f32.mrb[27].mxu0  ;;  %v2424_v23 = vpop.f32.mrb[29].mxu1 }
 0x120   : > { %v797_v24 = vpop.f32.mrb[30].mxu1 }
 0x121   : > { %2529 = vmatmul.mubr.msk.bf16.gmra.mrb[132].mxu0 %vm442_vm2, %v1136_v18  ;;  %v2425_v1 = vpop.f32.mrb[31].mxu1 }
 0x124   : > { %v588_v25 = vpop.f32.mrb[28].mxu0 }
 0x125   : > { %v3040_v26 = vadd.f32 %v794_v19, %v588_v25  ;;  %v2354_v28 = vpop.f32.mrb[29].mxu0 }
 0x126   : > { %v591_v30 = vpop.f32.mrb[30].mxu0  ;;  %v802_v31 = vpop.f32.mrb[32].mxu1 }
 0x127   : > { %v3042_v32 = vadd.f32 %v797_v24, %v591_v30  ;;  %v2355_v33 = vpop.f32.mrb[31].mxu0  ;;  %v2428_v34 = vpop.f32.mrb[33].mxu1 }
 0x128   : > { %v805_v35 = vpop.f32.mrb[34].mxu1 }
 0x129   : > { %v2429_v37 = vpop.f32.mrb[35].mxu1 }
 0x12c   : > { %v596_v38 = vpop.f32.mrb[32].mxu0 }
 0x12d   : > { %v3044_v39 = vadd.f32 %v802_v31, %v596_v38  ;;  %v2358_v41 = vpop.f32.mrb[33].mxu0 }
 0x12e   : > { %v599_v42 = vpop.f32.mrb[34].mxu0  ;;  %v810_v43 = vpop.f32.mrb[36].mxu1 }
 0x12f   : > { %v3046_v44 = vadd.f32 %v805_v35, %v599_v42  ;;  %v2359_v45 = vpop.f32.mrb[35].mxu0  ;;  %v2432_v46 = vpop.f32.mrb[37].mxu1 }
 0x130   : > { %v813_v49 = vpop.f32.mrb[38].mxu1 }
 0x131   : > { %v2433_v50 = vpop.f32.mrb[39].mxu1 }
 0x134   : > { %v604_v51 = vpop.f32.mrb[36].mxu0 }
 0x135   : > { %v3048_v52 = vadd.f32 %v810_v43, %v604_v51  ;;  %v2362_v53 = vpop.f32.mrb[37].mxu0 }
 0x136   : > { %v607_v55 = vpop.f32.mrb[38].mxu0  ;;  %v818_v56 = vpop.f32.mrb[40].mxu1 }
 0x137   : > { %v3050_v57 = vadd.f32 %v813_v49, %v607_v55  ;;  %v2363_v58 = vpop.f32.mrb[39].mxu0  ;;  %v2436_v59 = vpop.f32.mrb[41].mxu1 }
 0x138   : > { %v821_v61 = vpop.f32.mrb[42].mxu1 }
 0x139   : > { %v2437_v62 = vpop.f32.mrb[43].mxu1 }
 0x13c   : > { %v612_v63 = vpop.f32.mrb[40].mxu0 }
 0x13d   : > { %v3052_v0 = vadd.f32 %v818_v56, %v612_v63  ;;  %v2366_v3 = vpop.f32.mrb[41].mxu0 }
 0x13e   : > { %v615_v4 = vpop.f32.mrb[42].mxu0  ;;  %v826_v6 = vpop.f32.mrb[44].mxu1 }
 0x13f   : > { %v3054_v7 = vadd.f32 %v821_v61, %v615_v4  ;;  %v2367_v8 = vpop.f32.mrb[43].mxu0  ;;  %v2440_v10 = vpop.f32.mrb[45].mxu1 }
 0x140   : > { %v829_v11 = vpop.f32.mrb[46].mxu1 }
 0x141   : > { %v2441_v12 = vpop.f32.mrb[47].mxu1 }
 0x144   : > { %v620_v13 = vpop.f32.mrb[44].mxu0 }
 0x145   : > { %v3056_v14 = vadd.f32 %v826_v6, %v620_v13  ;;  %v2370_v16 = vpop.f32.mrb[45].mxu0 }
 0x146   : > { %v623_v17 = vpop.f32.mrb[46].mxu0  ;;  %v834_v18 = vpop.f32.mrb[48].mxu1 }
 0x147   : > { %v3058_v19 = vadd.f32 %v829_v11, %v623_v17  ;;  %v2371_v22 = vpop.f32.mrb[47].mxu0  ;;  %v2444_v23 = vpop.f32.mrb[49].mxu1 }
 0x148   : > { %v837_v24 = vpop.f32.mrb[50].mxu1 }
 0x149   : > { %v2445_v1 = vpop.f32.mrb[51].mxu1 }
 0x14c   : > { %v628_v25 = vpop.f32.mrb[48].mxu0 }
 0x14d   : > { %v3060_v28 = vadd.f32 %v834_v18, %v628_v25  ;;  %v2374_v30 = vpop.f32.mrb[49].mxu0 }
 0x14e   : > { %v631_v31 = vpop.f32.mrb[50].mxu0  ;;  %v842_v33 = vpop.f32.mrb[52].mxu1 }
 0x14f   : > { %v3062_v34 = vadd.f32 %v837_v24, %v631_v31  ;;  %v2375_v35 = vpop.f32.mrb[51].mxu0  ;;  %v2448_v37 = vpop.f32.mrb[53].mxu1 }
 0x150   : > { %v845_v38 = vpop.f32.mrb[54].mxu1 }
 0x151   : > { %v2449_v41 = vpop.f32.mrb[55].mxu1 }
 0x154   : > { %v636_v42 = vpop.f32.mrb[52].mxu0 }
 0x155   : > { %v3064_v43 = vadd.f32 %v842_v33, %v636_v42  ;;  %v2378_v45 = vpop.f32.mrb[53].mxu0 }
 0x156   : > { %v639_v46 = vpop.f32.mrb[54].mxu0  ;;  %v850_v49 = vpop.f32.mrb[56].mxu1 }
 0x157   : > { %v3066_v50 = vadd.f32 %v845_v38, %v639_v46  ;;  %v2379_v51 = vpop.f32.mrb[55].mxu0  ;;  %v2452_v53 = vpop.f32.mrb[57].mxu1 }
 0x158   : > { %v853_v55 = vpop.f32.mrb[58].mxu1  ;;  %v3084_v53 = vld [vmem:[%s3232_s2] ss:$0 sm:$0xff] }
 0x159   : > { %v2453_v56 = vpop.f32.mrb[59].mxu1 }
 0x15c   : > { %v644_v58 = vpop.f32.mrb[56].mxu0 }
 0x15d   : > { %v3068_v59 = vadd.f32 %v850_v49, %v644_v58  ;;  %v2382_v61 = vpop.f32.mrb[57].mxu0 }
 0x15e   : > { %v647_v62 = vpop.f32.mrb[58].mxu0  ;;  %v858_v63 = vpop.f32.mrb[60].mxu1 }
 0x15f   : > { %v3070_v3 = vadd.f32 %v853_v55, %v647_v62  ;;  %v2383_v4 = vpop.f32.mrb[59].mxu0  ;;  %v2456_v6 = vpop.f32.mrb[61].mxu1 }
 0x160   : > { %v861_v8 = vpop.f32.mrb[62].mxu1 }
 0x161   : > { %v2457_v10 = vpop.f32.mrb[63].mxu1 }
 0x164   : > { %v652_v11 = vpop.f32.mrb[60].mxu0 }
 0x165   : > { %v3072_v12 = vadd.f32 %v858_v63, %v652_v11  ;;  %v2386_v13 = vpop.f32.mrb[61].mxu0 }
 0x166   : > { %v655_v16 = vpop.f32.mrb[62].mxu0  ;;  %v866_v17 = vpop.f32.mrb[64].mxu1 }
 0x167   : > { %v3074_v18 = vadd.f32 %v861_v8, %v655_v16  ;;  %v2387_v22 = vpop.f32.mrb[63].mxu0  ;;  %v2460_v23 = vpop.f32.mrb[65].mxu1 }
 0x168   : > { %v869_v24 = vpop.f32.mrb[66].mxu1 }
 0x169   : > { %v2461_v1 = vpop.f32.mrb[67].mxu1 }
 0x16c   : > { %v660_v25 = vpop.f32.mrb[64].mxu0 }
 0x16d   : > { %v3076_v30 = vadd.f32 %v866_v17, %v660_v25  ;;  %v2390_v31 = vpop.f32.mrb[65].mxu0 }
 0x16e   : > { %v663_v33 = vpop.f32.mrb[66].mxu0  ;;  %v1527_v35 = vpop.f32.mrb[68].mxu1 }
 0x16f   : > { %v3078_v37 = vadd.f32 %v869_v24, %v663_v33  ;;  %v2391_v38 = vpop.f32.mrb[67].mxu0  ;;  %v2536_v41 = vpop.f32.mrb[69].mxu1 }
 0x170   : > { %v1530_v42 = vpop.f32.mrb[70].mxu1 }
 0x171   : > { %v2537_v45 = vpop.f32.mrb[71].mxu1 }
 0x174   : > { %v1225_v46 = vpop.f32.mrb[68].mxu0 }
 0x175   : > { %v1360_v49 = vadd.f32 %v1225_v46, %v2959_v29  ;;  %v2466_v51 = vpop.f32.mrb[69].mxu0 }
 0x176   : > { %v1228_v55 = vpop.f32.mrb[70].mxu0  ;;  %v1535_v56 = vpop.f32.mrb[72].mxu1 }
 0x177   : > { %v1662_v58 = vadd.f32 %v1527_v35, %v1360_v49  ;;  %v1361_v61 = vadd.f32 %v1228_v55, %v2962_v36  ;;  %v2467_v62 = vpop.f32.mrb[71].mxu0  ;;  %v2540_v63 = vpop.f32.mrb[73].mxu1 }
 0x178   : > { %v1538_v4 = vpop.f32.mrb[74].mxu1 }
 0x179   : > { %v1703_v6 = vadd.f32 %v3084_v53, %v1662_v58  ;;  %v1663_v8 = vadd.f32 %v1530_v42, %v1361_v61  ;;  %v2541_v10 = vpop.f32.mrb[75].mxu1 }
 0x17b   : > { %vm1737_vm5 = vcmp.gt.f32.partialorder %v1703_v6, 0.0  ;;  %v1771_v29 = vmul.f32 0.2, %v1703_v6  ;;  %v1704_v11 = vadd.f32 %v3084_v53, %v1663_v8 }
 0x17c   : > { %v1233_v13 = vpop.f32.mrb[72].mxu0 }
 0x17d   : > { %v1805_v36 = vsel %vm1737_vm5, %v1703_v6, %v1771_v29  ;;  %vm1738_vm7 = vcmp.gt.f32.partialorder %v1704_v11, 0.0  ;;  %v1772_v16 = vmul.f32 0.2, %v1704_v11  ;;  %v1362_v17 = vadd.f32 %v1233_v13, %v2972_v47  ;;  %v2470_v22 = vpop.f32.mrb[73].mxu0 }
 0x17e   : > { %v2216_v23 = vpack.c.bf16 %v1805_v36, %v1805_v36  ;;  %v1236_v24 = vpop.f32.mrb[74].mxu0  ;;  %v1543_v1 = vpop.f32.mrb[76].mxu1 }
 0x17f   : > { %v1806_v25 = vsel %vm1738_vm7, %v1704_v11, %v1772_v16  ;;  %v1664_v31 = vadd.f32 %v1535_v56, %v1362_v17  ;;  %v1363_v33 = vadd.f32 %v1236_v24, %v2975_v54  ;;  %v2471_v35 = vpop.f32.mrb[75].mxu0  ;;  %v2544_v38 = vpop.f32.mrb[77].mxu1 }
 0x180   : > { %1976 = vst.msk [vmem:[%s3093_s4] sm:$0xf] %vm1975_vm6, %v2216_v23  ;;  %v2217_v41 = vpack.c.bf16 %v1806_v25, %v1806_v25  ;;  %v1546_v42 = vpop.f32.mrb[78].mxu1 }
 0x181   : > { %v1705_v45 = vadd.f32 %v3084_v53, %v1664_v31  ;;  %v1665_v46 = vadd.f32 %v1538_v4, %v1363_v33  ;;  %v2545_v49 = vpop.f32.mrb[79].mxu1 }
 0x182   : > { %1977 = vst.msk [vmem:[%s3093_s4 + $0x4] sm:$0xf] %vm1975_vm6, %v2217_v41 }
 0x183   : > { %vm1739_vm8 = vcmp.gt.f32.partialorder %v1705_v45, 0.0  ;;  %v1773_v47 = vmul.f32 0.2, %v1705_v45  ;;  %v1706_v51 = vadd.f32 %v3084_v53, %v1665_v46 }
 0x184   : > { %v1241_v55 = vpop.f32.mrb[76].mxu0 }
 0x185   : > { %v1807_v56 = vsel %vm1739_vm8, %v1705_v45, %v1773_v47  ;;  %vm1740_vm9 = vcmp.gt.f32.partialorder %v1706_v51, 0.0  ;;  %v1774_v54 = vmul.f32 0.2, %v1706_v51  ;;  %v1364_v58 = vadd.f32 %v1241_v55, %v2985_v2  ;;  %v2474_v61 = vpop.f32.mrb[77].mxu0 }
 0x186   : > { %v2218_v62 = vpack.c.bf16 %v1807_v56, %v1807_v56  ;;  %v1244_v63 = vpop.f32.mrb[78].mxu0  ;;  %v1551_v6 = vpop.f32.mrb[80].mxu1 }
 0x187   : > { %v1808_v4 = vsel %vm1740_vm9, %v1706_v51, %v1774_v54  ;;  %v1666_v8 = vadd.f32 %v1543_v1, %v1364_v58  ;;  %v1365_v10 = vadd.f32 %v1244_v63, %v2988_v9  ;;  %v2475_v29 = vpop.f32.mrb[79].mxu0  ;;  %v2548_v11 = vpop.f32.mrb[81].mxu1 }
 0x188   : > { %1978 = vst.msk [vmem:[%s3093_s4 + $0x8] sm:$0xf] %vm1975_vm6, %v2218_v62  ;;  %v2219_v13 = vpack.c.bf16 %v1808_v4, %v1808_v4  ;;  %v1554_v36 = vpop.f32.mrb[82].mxu1 }
 0x189   : > { %v1707_v16 = vadd.f32 %v3084_v53, %v1666_v8  ;;  %v1667_v17 = vadd.f32 %v1546_v42, %v1365_v10  ;;  %v2549_v22 = vpop.f32.mrb[83].mxu1 }
 0x18a   : > { %1979 = vst.msk [vmem:[%s3093_s4 + $0xc] sm:$0xf] %vm1975_vm6, %v2219_v13 }
 0x18b   : > { %vm1741_vm10 = vcmp.gt.f32.partialorder %v1707_v16, 0.0  ;;  %v1775_v2 = vmul.f32 0.2, %v1707_v16  ;;  %v1708_v23 = vadd.f32 %v3084_v53, %v1667_v17 }
 0x18c   : > { %v1249_v24 = vpop.f32.mrb[80].mxu0 }
 0x18d   : > { %v1809_v1 = vsel %vm1741_vm10, %v1707_v16, %v1775_v2  ;;  %vm1742_vm11 = vcmp.gt.f32.partialorder %v1708_v23, 0.0  ;;  %v1776_v9 = vmul.f32 0.2, %v1708_v23  ;;  %v1366_v25 = vadd.f32 %v1249_v24, %v2998_v20  ;;  %v2478_v31 = vpop.f32.mrb[81].mxu0 }
 0x18e   : > { %v2220_v33 = vpack.c.bf16 %v1809_v1, %v1809_v1  ;;  %v1252_v35 = vpop.f32.mrb[82].mxu0  ;;  %v1559_v38 = vpop.f32.mrb[84].mxu1 }
 0x18f   : > { %v1810_v41 = vsel %vm1742_vm11, %v1708_v23, %v1776_v9  ;;  %v1668_v42 = vadd.f32 %v1551_v6, %v1366_v25  ;;  %v1367_v45 = vadd.f32 %v1252_v35, %v3001_v27  ;;  %v2479_v46 = vpop.f32.mrb[83].mxu0  ;;  %v2552_v49 = vpop.f32.mrb[85].mxu1 }
 0x190   : > { %1980 = vst.msk [vmem:[%s3093_s4 + $0x10] sm:$0xf] %vm1975_vm6, %v2220_v33  ;;  %v2221_v47 = vpack.c.bf16 %v1810_v41, %v1810_v41  ;;  %v1562_v51 = vpop.f32.mrb[86].mxu1 }
 0x191   : > { %v1709_v55 = vadd.f32 %v3084_v53, %v1668_v42  ;;  %v1669_v56 = vadd.f32 %v1554_v36, %v1367_v45  ;;  %v2553_v54 = vpop.f32.mrb[87].mxu1 }
 0x192   : > { %1981 = vst.msk [vmem:[%s3093_s4 + $0x14] sm:$0xf] %vm1975_vm6, %v2221_v47 }
 0x193   : > { %vm1743_vm12 = vcmp.gt.f32.partialorder %v1709_v55, 0.0  ;;  %v1777_v20 = vmul.f32 0.2, %v1709_v55  ;;  %v1710_v58 = vadd.f32 %v3084_v53, %v1669_v56 }
 0x194   : > { %v1257_v61 = vpop.f32.mrb[84].mxu0 }
 0x195   : > { %v1811_v62 = vsel %vm1743_vm12, %v1709_v55, %v1777_v20  ;;  %vm1744_vm13 = vcmp.gt.f32.partialorder %v1710_v58, 0.0  ;;  %v1778_v27 = vmul.f32 0.2, %v1710_v58  ;;  %v1368_v63 = vadd.f32 %v1257_v61, %v3011_v40  ;;  %v2482_v6 = vpop.f32.mrb[85].mxu0 }
 0x196   : > { %v2222_v4 = vpack.c.bf16 %v1811_v62, %v1811_v62  ;;  %v1260_v8 = vpop.f32.mrb[86].mxu0  ;;  %v1567_v10 = vpop.f32.mrb[88].mxu1 }
 0x197   : > { %v1812_v29 = vsel %vm1744_vm13, %v1710_v58, %v1778_v27  ;;  %v1670_v11 = vadd.f32 %v1559_v38, %v1368_v63  ;;  %v1369_v13 = vadd.f32 %v1260_v8, %v3014_v48  ;;  %v2483_v36 = vpop.f32.mrb[87].mxu0  ;;  %v2556_v16 = vpop.f32.mrb[89].mxu1 }
 0x198   : > { %1982 = vst.msk [vmem:[%s3093_s4 + $0x18] sm:$0xf] %vm1975_vm6, %v2222_v4  ;;  %v2223_v17 = vpack.c.bf16 %v1812_v29, %v1812_v29  ;;  %v1570_v22 = vpop.f32.mrb[90].mxu1 }
 0x199   : > { %v1711_v2 = vadd.f32 %v3084_v53, %v1670_v11  ;;  %v1671_v23 = vadd.f32 %v1562_v51, %v1369_v13  ;;  %v2557_v24 = vpop.f32.mrb[91].mxu1 }
 0x19a   : > { %1983 = vst.msk [vmem:[%s3093_s4 + $0x1c] sm:$0xf] %vm1975_vm6, %v2223_v17 }
 0x19b   : > { %vm1745_vm14 = vcmp.gt.f32.partialorder %v1711_v2, 0.0  ;;  %v1779_v40 = vmul.f32 0.2, %v1711_v2  ;;  %v1712_v1 = vadd.f32 %v3084_v53, %v1671_v23 }
 0x19c   : > { %v1265_v9 = vpop.f32.mrb[88].mxu0 }
 0x19d   : > { %v1813_v25 = vsel %vm1745_vm14, %v1711_v2, %v1779_v40  ;;  %vm1746_vm15 = vcmp.gt.f32.partialorder %v1712_v1, 0.0  ;;  %v1780_v48 = vmul.f32 0.2, %v1712_v1  ;;  %v1370_v31 = vadd.f32 %v1265_v9, %v3024_v60  ;;  %v2486_v33 = vpop.f32.mrb[89].mxu0 }
 0x19e   : > { %v2224_v35 = vpack.c.bf16 %v1813_v25, %v1813_v25  ;;  %v1268_v38 = vpop.f32.mrb[90].mxu0  ;;  %v1575_v41 = vpop.f32.mrb[92].mxu1 }
 0x19f   : > { %v1814_v42 = vsel %vm1746_vm15, %v1712_v1, %v1780_v48  ;;  %v1672_v45 = vadd.f32 %v1567_v10, %v1370_v31  ;;  %v1371_v46 = vadd.f32 %v1268_v38, %v3027_v5  ;;  %v2487_v49 = vpop.f32.mrb[91].mxu0  ;;  %v2560_v47 = vpop.f32.mrb[93].mxu1 }
 0x1a0   : > { %1984 = vst.msk [vmem:[%s3093_s4 + $0x20] sm:$0xf] %vm1975_vm6, %v2224_v35  ;;  %v2225_v51 = vpack.c.bf16 %v1814_v42, %v1814_v42  ;;  %v1578_v55 = vpop.f32.mrb[94].mxu1 }
 0x1a1   : > { %v1713_v56 = vadd.f32 %v3084_v53, %v1672_v45  ;;  %v1673_v54 = vadd.f32 %v1570_v22, %v1371_v46  ;;  %v2561_v20 = vpop.f32.mrb[95].mxu1 }
 0x1a2   : > { %1985 = vst.msk [vmem:[%s3093_s4 + $0x24] sm:$0xf] %vm1975_vm6, %v2225_v51 }
 0x1a3   : > { %vm1747_vm0 = vcmp.gt.f32.partialorder %v1713_v56, 0.0  ;;  %v1781_v60 = vmul.f32 0.2, %v1713_v56  ;;  %v1714_v58 = vadd.f32 %v3084_v53, %v1673_v54 }
 0x1a4   : > { %v1273_v61 = vpop.f32.mrb[92].mxu0 }
 0x1a5   : > { %v1815_v62 = vsel %vm1747_vm0, %v1713_v56, %v1781_v60  ;;  %vm1748_vm1 = vcmp.gt.f32.partialorder %v1714_v58, 0.0  ;;  %v1782_v5 = vmul.f32 0.2, %v1714_v58  ;;  %v1372_v27 = vadd.f32 %v1273_v61, %v3034_v15  ;;  %v2490_v63 = vpop.f32.mrb[93].mxu0 }
 0x1a6   : > { %v2226_v6 = vpack.c.bf16 %v1815_v62, %v1815_v62  ;;  %v1276_v4 = vpop.f32.mrb[94].mxu0  ;;  %v1583_v8 = vpop.f32.mrb[96].mxu1 }
 0x1a7   : > { %v1816_v10 = vsel %vm1748_vm1, %v1714_v58, %v1782_v5  ;;  %v1674_v29 = vadd.f32 %v1575_v41, %v1372_v27  ;;  %v1373_v11 = vadd.f32 %v1276_v4, %v3037_v21  ;;  %v2491_v13 = vpop.f32.mrb[95].mxu0  ;;  %v2564_v36 = vpop.f32.mrb[97].mxu1 }
 0x1a8   : > { %1986 = vst.msk [vmem:[%s3093_s4 + $0x28] sm:$0xf] %vm1975_vm6, %v2226_v6  ;;  %v2227_v16 = vpack.c.bf16 %v1816_v10, %v1816_v10  ;;  %v1586_v17 = vpop.f32.mrb[98].mxu1 }
 0x1a9   : > { %v1715_v22 = vadd.f32 %v3084_v53, %v1674_v29  ;;  %v1675_v2 = vadd.f32 %v1578_v55, %v1373_v11  ;;  %v2565_v23 = vpop.f32.mrb[99].mxu1 }
 0x1aa   : > { %1987 = vst.msk [vmem:[%s3093_s4 + $0x2c] sm:$0xf] %vm1975_vm6, %v2227_v16 }
 0x1ab   : > { %vm1749_vm2 = vcmp.gt.f32.partialorder %v1715_v22, 0.0  ;;  %v1783_v15 = vmul.f32 0.2, %v1715_v22  ;;  %v1716_v24 = vadd.f32 %v3084_v53, %v1675_v2 }
 0x1ac   : > { %v1281_v40 = vpop.f32.mrb[96].mxu0 }
 0x1ad   : > { %v1817_v1 = vsel %vm1749_vm2, %v1715_v22, %v1783_v15  ;;  %vm1750_vm3 = vcmp.gt.f32.partialorder %v1716_v24, 0.0  ;;  %v1784_v21 = vmul.f32 0.2, %v1716_v24  ;;  %v1374_v9 = vadd.f32 %v1281_v40, %v3040_v26  ;;  %v2494_v25 = vpop.f32.mrb[97].mxu0 }
 0x1ae   : > { %v2228_v48 = vpack.c.bf16 %v1817_v1, %v1817_v1  ;;  %v1284_v31 = vpop.f32.mrb[98].mxu0  ;;  %v1591_v33 = vpop.f32.mrb[100].mxu1 }
 0x1af   : > { %v1818_v35 = vsel %vm1750_vm3, %v1716_v24, %v1784_v21  ;;  %v1676_v38 = vadd.f32 %v1583_v8, %v1374_v9  ;;  %v1375_v41 = vadd.f32 %v1284_v31, %v3042_v32  ;;  %v2495_v42 = vpop.f32.mrb[99].mxu0  ;;  %v2568_v45 = vpop.f32.mrb[101].mxu1 }
 0x1b0   : > { %1988 = vst.msk [vmem:[%s3093_s4 + $0x30] sm:$0xf] %vm1975_vm6, %v2228_v48  ;;  %v2229_v46 = vpack.c.bf16 %v1818_v35, %v1818_v35  ;;  %v1594_v49 = vpop.f32.mrb[102].mxu1 }
 0x1b1   : > { %v1717_v47 = vadd.f32 %v3084_v53, %v1676_v38  ;;  %v1677_v51 = vadd.f32 %v1586_v17, %v1375_v41  ;;  %v2569_v55 = vpop.f32.mrb[103].mxu1 }
 0x1b2   : > { %1989 = vst.msk [vmem:[%s3093_s4 + $0x34] sm:$0xf] %vm1975_vm6, %v2229_v46 }
 0x1b3   : > { %vm1751_vm4 = vcmp.gt.f32.partialorder %v1717_v47, 0.0  ;;  %v1785_v26 = vmul.f32 0.2, %v1717_v47  ;;  %v1718_v56 = vadd.f32 %v3084_v53, %v1677_v51 }
 0x1b4   : > { %v1289_v54 = vpop.f32.mrb[100].mxu0 }
 0x1b5   : > { %v1819_v20 = vsel %vm1751_vm4, %v1717_v47, %v1785_v26  ;;  %vm1752_vm5 = vcmp.gt.f32.partialorder %v1718_v56, 0.0  ;;  %v1786_v32 = vmul.f32 0.2, %v1718_v56  ;;  %v1376_v60 = vadd.f32 %v1289_v54, %v3044_v39  ;;  %v2498_v58 = vpop.f32.mrb[101].mxu0 }
 0x1b6   : > { %v2230_v61 = vpack.c.bf16 %v1819_v20, %v1819_v20  ;;  %v1292_v62 = vpop.f32.mrb[102].mxu0  ;;  %v1599_v5 = vpop.f32.mrb[104].mxu1 }
 0x1b7   : > { %v1820_v27 = vsel %vm1752_vm5, %v1718_v56, %v1786_v32  ;;  %v1678_v63 = vadd.f32 %v1591_v33, %v1376_v60  ;;  %v1377_v6 = vadd.f32 %v1292_v62, %v3046_v44  ;;  %v2499_v4 = vpop.f32.mrb[103].mxu0  ;;  %v2572_v8 = vpop.f32.mrb[105].mxu1 }
 0x1b8   : > { %1990 = vst.msk [vmem:[%s3093_s4 + $0x38] sm:$0xf] %vm1975_vm6, %v2230_v61  ;;  %v2231_v10 = vpack.c.bf16 %v1820_v27, %v1820_v27  ;;  %v1602_v29 = vpop.f32.mrb[106].mxu1 }
 0x1b9   : > { %v1719_v11 = vadd.f32 %v3084_v53, %v1678_v63  ;;  %v1679_v13 = vadd.f32 %v1594_v49, %v1377_v6  ;;  %v2573_v36 = vpop.f32.mrb[107].mxu1 }
 0x1ba   : > { %1991 = vst.msk [vmem:[%s3093_s4 + $0x3c] sm:$0xf] %vm1975_vm6, %v2231_v10 }
 0x1bb   : > { %vm1753_vm7 = vcmp.gt.f32.partialorder %v1719_v11, 0.0  ;;  %v1787_v39 = vmul.f32 0.2, %v1719_v11  ;;  %v1720_v16 = vadd.f32 %v3084_v53, %v1679_v13 }
 0x1bc   : > { %v1297_v17 = vpop.f32.mrb[104].mxu0 }
 0x1bd   : > { %v1821_v22 = vsel %vm1753_vm7, %v1719_v11, %v1787_v39  ;;  %vm1754_vm8 = vcmp.gt.f32.partialorder %v1720_v16, 0.0  ;;  %v1788_v44 = vmul.f32 0.2, %v1720_v16  ;;  %v1378_v2 = vadd.f32 %v1297_v17, %v3048_v52  ;;  %v2502_v23 = vpop.f32.mrb[105].mxu0 }
 0x1be   : > { %v2232_v15 = vpack.c.bf16 %v1821_v22, %v1821_v22  ;;  %v1300_v24 = vpop.f32.mrb[106].mxu0  ;;  %v1607_v40 = vpop.f32.mrb[108].mxu1 }
 0x1bf   : > { %v1822_v1 = vsel %vm1754_vm8, %v1720_v16, %v1788_v44  ;;  %v1680_v21 = vadd.f32 %v1599_v5, %v1378_v2  ;;  %v1379_v9 = vadd.f32 %v1300_v24, %v3050_v57  ;;  %v2503_v25 = vpop.f32.mrb[107].mxu0  ;;  %v2576_v48 = vpop.f32.mrb[109].mxu1 }
 0x1c0   : > { %1992 = vst.msk [vmem:[%s3093_s4 + $0x40] sm:$0xf] %vm1975_vm6, %v2232_v15  ;;  %v2233_v31 = vpack.c.bf16 %v1822_v1, %v1822_v1  ;;  %v1610_v33 = vpop.f32.mrb[110].mxu1 }
 0x1c1   : > { %v1721_v35 = vadd.f32 %v3084_v53, %v1680_v21  ;;  %v1681_v38 = vadd.f32 %v1602_v29, %v1379_v9  ;;  %v2577_v41 = vpop.f32.mrb[111].mxu1 }
 0x1c2   : > { %1993 = vst.msk [vmem:[%s3093_s4 + $0x44] sm:$0xf] %vm1975_vm6, %v2233_v31 }
 0x1c3   : > { %vm1755_vm9 = vcmp.gt.f32.partialorder %v1721_v35, 0.0  ;;  %v1789_v52 = vmul.f32 0.2, %v1721_v35  ;;  %v1722_v42 = vadd.f32 %v3084_v53, %v1681_v38 }
 0x1c4   : > { %v1305_v45 = vpop.f32.mrb[108].mxu0 }
 0x1c5   : > { %v1823_v46 = vsel %vm1755_vm9, %v1721_v35, %v1789_v52  ;;  %vm1756_vm10 = vcmp.gt.f32.partialorder %v1722_v42, 0.0  ;;  %v1790_v57 = vmul.f32 0.2, %v1722_v42  ;;  %v1380_v49 = vadd.f32 %v1305_v45, %v3052_v0  ;;  %v2506_v47 = vpop.f32.mrb[109].mxu0 }
 0x1c6   : > { %v2234_v51 = vpack.c.bf16 %v1823_v46, %v1823_v46  ;;  %v1308_v55 = vpop.f32.mrb[110].mxu0  ;;  %v1615_v26 = vpop.f32.mrb[112].mxu1 }
 0x1c7   : > { %v1824_v56 = vsel %vm1756_vm10, %v1722_v42, %v1790_v57  ;;  %v1682_v54 = vadd.f32 %v1607_v40, %v1380_v49  ;;  %v1381_v20 = vadd.f32 %v1308_v55, %v3054_v7  ;;  %v2507_v32 = vpop.f32.mrb[111].mxu0  ;;  %v2580_v60 = vpop.f32.mrb[113].mxu1 }
 0x1c8   : > { %1994 = vst.msk [vmem:[%s3093_s4 + $0x48] sm:$0xf] %vm1975_vm6, %v2234_v51  ;;  %v2235_v58 = vpack.c.bf16 %v1824_v56, %v1824_v56  ;;  %v1618_v61 = vpop.f32.mrb[114].mxu1 }
 0x1c9   : > { %v1723_v62 = vadd.f32 %v3084_v53, %v1682_v54  ;;  %v1683_v5 = vadd.f32 %v1610_v33, %v1381_v20  ;;  %v2581_v27 = vpop.f32.mrb[115].mxu1 }
 0x1ca   : > { %1995 = vst.msk [vmem:[%s3093_s4 + $0x4c] sm:$0xf] %vm1975_vm6, %v2235_v58 }
 0x1cb   : > { %vm1757_vm11 = vcmp.gt.f32.partialorder %v1723_v62, 0.0  ;;  %v1791_v0 = vmul.f32 0.2, %v1723_v62  ;;  %v1724_v63 = vadd.f32 %v3084_v53, %v1683_v5 }
 0x1cc   : > { %v1313_v6 = vpop.f32.mrb[112].mxu0 }
 0x1cd   : > { %v1825_v4 = vsel %vm1757_vm11, %v1723_v62, %v1791_v0  ;;  %vm1758_vm12 = vcmp.gt.f32.partialorder %v1724_v63, 0.0  ;;  %v1792_v7 = vmul.f32 0.2, %v1724_v63  ;;  %v1382_v8 = vadd.f32 %v1313_v6, %v3056_v14  ;;  %v2510_v10 = vpop.f32.mrb[113].mxu0 }
 0x1ce   : > { %v2236_v29 = vpack.c.bf16 %v1825_v4, %v1825_v4  ;;  %v1316_v11 = vpop.f32.mrb[114].mxu0  ;;  %v1623_v13 = vpop.f32.mrb[116].mxu1 }
 0x1cf   : > { %v1826_v36 = vsel %vm1758_vm12, %v1724_v63, %v1792_v7  ;;  %v1684_v39 = vadd.f32 %v1615_v26, %v1382_v8  ;;  %v1383_v16 = vadd.f32 %v1316_v11, %v3058_v19  ;;  %v2511_v17 = vpop.f32.mrb[115].mxu0  ;;  %v2584_v22 = vpop.f32.mrb[117].mxu1 }
 0x1d0   : > { %1996 = vst.msk [vmem:[%s3093_s4 + $0x50] sm:$0xf] %vm1975_vm6, %v2236_v29  ;;  %v2237_v44 = vpack.c.bf16 %v1826_v36, %v1826_v36  ;;  %v1626_v2 = vpop.f32.mrb[118].mxu1 }
 0x1d1   : > { %v1725_v23 = vadd.f32 %v3084_v53, %v1684_v39  ;;  %v1685_v15 = vadd.f32 %v1618_v61, %v1383_v16  ;;  %v2585_v24 = vpop.f32.mrb[119].mxu1 }
 0x1d2   : > { %1997 = vst.msk [vmem:[%s3093_s4 + $0x54] sm:$0xf] %vm1975_vm6, %v2237_v44 }
 0x1d3   : > { %vm1759_vm13 = vcmp.gt.f32.partialorder %v1725_v23, 0.0  ;;  %v1793_v14 = vmul.f32 0.2, %v1725_v23  ;;  %v1726_v40 = vadd.f32 %v3084_v53, %v1685_v15 }
 0x1d4   : > { %v1321_v1 = vpop.f32.mrb[116].mxu0 }
 0x1d5   : > { %v1827_v21 = vsel %vm1759_vm13, %v1725_v23, %v1793_v14  ;;  %vm1760_vm14 = vcmp.gt.f32.partialorder %v1726_v40, 0.0  ;;  %v1794_v19 = vmul.f32 0.2, %v1726_v40  ;;  %v1384_v9 = vadd.f32 %v1321_v1, %v3060_v28  ;;  %v2514_v25 = vpop.f32.mrb[117].mxu0 }
 0x1d6   : > { %v2238_v48 = vpack.c.bf16 %v1827_v21, %v1827_v21  ;;  %v1324_v31 = vpop.f32.mrb[118].mxu0  ;;  %v1631_v33 = vpop.f32.mrb[120].mxu1 }
 0x1d7   : > { %v1828_v35 = vsel %vm1760_vm14, %v1726_v40, %v1794_v19  ;;  %v1686_v38 = vadd.f32 %v1623_v13, %v1384_v9  ;;  %v1385_v41 = vadd.f32 %v1324_v31, %v3062_v34  ;;  %v2515_v52 = vpop.f32.mrb[119].mxu0  ;;  %v2588_v42 = vpop.f32.mrb[121].mxu1 }
 0x1d8   : > { %1998 = vst.msk [vmem:[%s3093_s4 + $0x58] sm:$0xf] %vm1975_vm6, %v2238_v48  ;;  %v2239_v45 = vpack.c.bf16 %v1828_v35, %v1828_v35  ;;  %v1634_v46 = vpop.f32.mrb[122].mxu1 }
 0x1d9   : > { %v1727_v57 = vadd.f32 %v3084_v53, %v1686_v38  ;;  %v1687_v49 = vadd.f32 %v1626_v2, %v1385_v41  ;;  %v2589_v47 = vpop.f32.mrb[123].mxu1 }
 0x1da   : > { %1999 = vst.msk [vmem:[%s3093_s4 + $0x5c] sm:$0xf] %vm1975_vm6, %v2239_v45 }
 0x1db   : > { %vm1761_vm15 = vcmp.gt.f32.partialorder %v1727_v57, 0.0  ;;  %v1795_v28 = vmul.f32 0.2, %v1727_v57  ;;  %v1728_v51 = vadd.f32 %v3084_v53, %v1687_v49 }
 0x1dc   : > { %v1329_v55 = vpop.f32.mrb[120].mxu0 }
 0x1dd   : > { %v1829_v26 = vsel %vm1761_vm15, %v1727_v57, %v1795_v28  ;;  %vm1762_vm0 = vcmp.gt.f32.partialorder %v1728_v51, 0.0  ;;  %v1796_v34 = vmul.f32 0.2, %v1728_v51  ;;  %v1386_v56 = vadd.f32 %v1329_v55, %v3064_v43  ;;  %v2518_v54 = vpop.f32.mrb[121].mxu0 }
 0x1de   : > { %v2240_v20 = vpack.c.bf16 %v1829_v26, %v1829_v26  ;;  %v1332_v32 = vpop.f32.mrb[122].mxu0  ;;  %v1639_v60 = vpop.f32.mrb[124].mxu1 }
 0x1df   : > { %v1830_v58 = vsel %vm1762_vm0, %v1728_v51, %v1796_v34  ;;  %v1688_v61 = vadd.f32 %v1631_v33, %v1386_v56  ;;  %v1387_v62 = vadd.f32 %v1332_v32, %v3066_v50  ;;  %v2519_v5 = vpop.f32.mrb[123].mxu0  ;;  %v2592_v27 = vpop.f32.mrb[125].mxu1 }
 0x1e0   : > { %2000 = vst.msk [vmem:[%s3093_s4 + $0x60] sm:$0xf] %vm1975_vm6, %v2240_v20  ;;  %v2241_v0 = vpack.c.bf16 %v1830_v58, %v1830_v58  ;;  %v1642_v63 = vpop.f32.mrb[126].mxu1 }
 0x1e1   : > { %v1729_v6 = vadd.f32 %v3084_v53, %v1688_v61  ;;  %v1689_v4 = vadd.f32 %v1634_v46, %v1387_v62  ;;  %v2593_v7 = vpop.f32.mrb[127].mxu1 }
 0x1e2   : > { %2001 = vst.msk [vmem:[%s3093_s4 + $0x64] sm:$0xf] %vm1975_vm6, %v2241_v0 }
 0x1e3   : > { %vm1763_vm1 = vcmp.gt.f32.partialorder %v1729_v6, 0.0  ;;  %v1797_v43 = vmul.f32 0.2, %v1729_v6  ;;  %v1730_v8 = vadd.f32 %v3084_v53, %v1689_v4 }
 0x1e4   : > { %v1337_v10 = vpop.f32.mrb[124].mxu0 }
 0x1e5   : > { %v1831_v29 = vsel %vm1763_vm1, %v1729_v6, %v1797_v43  ;;  %vm1764_vm2 = vcmp.gt.f32.partialorder %v1730_v8, 0.0  ;;  %v1798_v50 = vmul.f32 0.2, %v1730_v8  ;;  %v1388_v11 = vadd.f32 %v1337_v10, %v3068_v59  ;;  %v2522_v13 = vpop.f32.mrb[125].mxu0 }
 0x1e6   : > { %v2242_v36 = vpack.c.bf16 %v1831_v29, %v1831_v29  ;;  %v1340_v39 = vpop.f32.mrb[126].mxu0  ;;  %v1647_v16 = vpop.f32.mrb[128].mxu1 }
 0x1e7   : > { %v1832_v17 = vsel %vm1764_vm2, %v1730_v8, %v1798_v50  ;;  %v1690_v22 = vadd.f32 %v1639_v60, %v1388_v11  ;;  %v1389_v44 = vadd.f32 %v1340_v39, %v3070_v3  ;;  %v2523_v2 = vpop.f32.mrb[127].mxu0  ;;  %v2596_v23 = vpop.f32.mrb[129].mxu1 }
 0x1e8   : > { %2002 = vst.msk [vmem:[%s3093_s4 + $0x68] sm:$0xf] %vm1975_vm6, %v2242_v36  ;;  %v2243_v15 = vpack.c.bf16 %v1832_v17, %v1832_v17  ;;  %v1650_v24 = vpop.f32.mrb[130].mxu1 }
 0x1e9   : > { %v1731_v14 = vadd.f32 %v3084_v53, %v1690_v22  ;;  %v1691_v40 = vadd.f32 %v1642_v63, %v1389_v44  ;;  %v2597_v1 = vpop.f32.mrb[131].mxu1 }
 0x1ea   : > { %2003 = vst.msk [vmem:[%s3093_s4 + $0x6c] sm:$0xf] %vm1975_vm6, %v2243_v15 }
 0x1eb   : > { %vm1765_vm3 = vcmp.gt.f32.partialorder %v1731_v14, 0.0  ;;  %v1799_v59 = vmul.f32 0.2, %v1731_v14  ;;  %v1732_v21 = vadd.f32 %v3084_v53, %v1691_v40 }
 0x1ec   : > { %v1345_v19 = vpop.f32.mrb[128].mxu0 }
 0x1ed   : > { %v1833_v9 = vsel %vm1765_vm3, %v1731_v14, %v1799_v59  ;;  %vm1766_vm4 = vcmp.gt.f32.partialorder %v1732_v21, 0.0  ;;  %v1800_v3 = vmul.f32 0.2, %v1732_v21  ;;  %v1390_v25 = vadd.f32 %v1345_v19, %v3072_v12  ;;  %v2526_v48 = vpop.f32.mrb[129].mxu0 }
 0x1ee   : > { %v2244_v31 = vpack.c.bf16 %v1833_v9, %v1833_v9  ;;  %v1348_v33 = vpop.f32.mrb[130].mxu0  ;;  %v1655_v35 = vpop.f32.mrb[132].mxu1 }
 0x1ef   : > { %v1834_v38 = vsel %vm1766_vm4, %v1732_v21, %v1800_v3  ;;  %v1692_v41 = vadd.f32 %v1647_v16, %v1390_v25  ;;  %v1391_v52 = vadd.f32 %v1348_v33, %v3074_v18  ;;  %v2527_v42 = vpop.f32.mrb[131].mxu0  ;;  %v2600_v45 = vpop.f32.mrb[133].mxu1 }
 0x1f0   : > { %2004 = vst.msk [vmem:[%s3093_s4 + $0x70] sm:$0xf] %vm1975_vm6, %v2244_v31  ;;  %v2245_v46 = vpack.c.bf16 %v1834_v38, %v1834_v38  ;;  %v1658_v57 = vpop.f32.mrb[134].mxu1 }
 0x1f1   : > { %v1733_v49 = vadd.f32 %v3084_v53, %v1692_v41  ;;  %v1693_v47 = vadd.f32 %v1650_v24, %v1391_v52  ;;  %v2601_v28 = vpop.f32.mrb[135].mxu1 }
 0x1f2   : > { %2005 = vst.msk [vmem:[%s3093_s4 + $0x74] sm:$0xf] %vm1975_vm6, %v2245_v46 }
 0x1f3   : > { %vm1767_vm5 = vcmp.gt.f32.partialorder %v1733_v49, 0.0  ;;  %v1801_v12 = vmul.f32 0.2, %v1733_v49  ;;  %v1734_v51 = vadd.f32 %v3084_v53, %v1693_v47 }
 0x1f4   : > { %v1353_v55 = vpop.f32.mrb[132].mxu0 }
 0x1f5   : > { %v1835_v18 = vsel %vm1767_vm5, %v1733_v49, %v1801_v12  ;;  %vm1768_vm7 = vcmp.gt.f32.partialorder %v1734_v51, 0.0  ;;  %v1802_v26 = vmul.f32 0.2, %v1734_v51  ;;  %v1392_v34 = vadd.f32 %v1353_v55, %v3076_v30  ;;  %v2530_v56 = vpop.f32.mrb[133].mxu0 }
 0x1f6   : > { %v2246_v54 = vpack.c.bf16 %v1835_v18, %v1835_v18  ;;  %v1356_v20 = vpop.f32.mrb[134].mxu0 }
 0x1f7   : > { %v1836_v32 = vsel %vm1768_vm7, %v1734_v51, %v1802_v26  ;;  %v1694_v60 = vadd.f32 %v1655_v35, %v1392_v34  ;;  %v1393_v58 = vadd.f32 %v1356_v20, %v3078_v37  ;;  %v2531_v61 = vpop.f32.mrb[135].mxu0 }
 0x1f8   : > { %2006 = vst.msk [vmem:[%s3093_s4 + $0x78] sm:$0xf] %vm1975_vm6, %v2246_v54  ;;  %v2247_v62 = vpack.c.bf16 %v1836_v32, %v1836_v32 }
 0x1f9   : > { %v1735_v5 = vadd.f32 %v3084_v53, %v1694_v60  ;;  %v1695_v27 = vadd.f32 %v1658_v57, %v1393_v58 }
 0x1fa   : > { %2007 = vst.msk [vmem:[%s3093_s4 + $0x7c] sm:$0xf] %vm1975_vm6, %v2247_v62 }
 0x1fb   : > { %vm1769_vm8 = vcmp.gt.f32.partialorder %v1735_v5, 0.0  ;;  %v1803_v30 = vmul.f32 0.2, %v1735_v5  ;;  %v1736_v0 = vadd.f32 %v3084_v53, %v1695_v27 }
 0x1fd   : > { %v1837_v63 = vsel %vm1769_vm8, %v1735_v5, %v1803_v30  ;;  %vm1770_vm9 = vcmp.gt.f32.partialorder %v1736_v0, 0.0  ;;  %v1804_v6 = vmul.f32 0.2, %v1736_v0 }
 0x1fe   : > { %v2248_v4 = vpack.c.bf16 %v1837_v63, %v1837_v63 }
 0x1ff   : > { %v1838_v7 = vsel %vm1770_vm9, %v1736_v0, %v1804_v6 }
 0x200   : > { %2008 = vst.msk [vmem:[%s3093_s4 + $0x80] sm:$0xf] %vm1975_vm6, %v2248_v4  ;;  %v2249_v37 = vpack.c.bf16 %v1838_v7, %v1838_v7 }
 0x202   : > { %2009 = vst.msk [vmem:[%s3093_s4 + $0x84] sm:$0xf] %vm1975_vm6, %v2249_v37 }
 0x203 PF: > { %s13_s12 = sadd.s32 1, %s2659_s12  }
 0x204   : > { %p10_p4 = scmp.ge.s32.totalorder %s13_s12, 4  }
 0x206   :  { %12 = sbr.rel (!%p10_p4) target bundleno = 1 (0x1), region = 62 }

// kernel: discriminator_forward.4
= control target key start
LH: loop header
LB: loop body
LE: loop exit
PB: predicated region body
PF: predicated region fallthrough
CT: control target
= control target key end

     0   :  { %s1162_s12 = smov 0   ;;  %s1354_s0 = inlined_call_operand.vmem [shape: bf16[2,90,32], index: 0, kind: input, shape index: {}]   ;;  %s1355_s1 = inlined_call_operand.vmem [shape: bf16[128,32], index: 1, kind: input, shape index: {}]   ;;  %s1356_s2 = inlined_call_operand.vmem [shape: f32[1,32], index: 2, kind: input, shape index: {}]   ;;  %s1357_s3 = inlined_call_operand.vmem [shape: bf16[2,72,32], index: 3, kind: output, shape index: {}]  }
   0x1 LB: > { %s908_s13 = sadd.s32 4294967295, %s1138_s12   ;;  %p912_p0 = scmp.ge.s32.totalorder %s1138_s12, 1  ;;  %s1138_s12 = sphi %s1162_s12, %s13_s12  }
   0x2   : > { %p137_p1 = scmp.lt.s32.totalorder %s1138_s12, 3 }
   0x4   : > { %p138_p2 = pnand %p912_p0, %p137_p1 }
   0x5   : > { %v1112_v0 = vld [vmem:[%s1355_s1 + $0x10] sm:$0xff] (!%p138_p2)   ;;  %v1140_v1 = vmov (!%p138_p2), 0.0   ;;  %v1113_v2 = vld [vmem:[%s1355_s1] sm:$0xff] (!%p138_p2)   ;;  %v1114_v3 = vld [vmem:[%s1355_s1 + $0x18] sm:$0xff] (!%p138_p2)   ;;  %vm1141_vm0 = vmmov (!%p138_p2), 0   ;;  %p161_p3 = scmp.lt.s32.totalorder (!%p138_p2), %s908_s13, 1 }
   0x6   : > { %141 = sbr.rel (%p138_p2) target bundleno = 321 (0x141), region = 32  ;;  %1004 = vmatprep.subr.bf16.mxu0 (!%p138_p2), %v1140_v1  ;;  %1028 = vmatprep.subr.bf16.mxu1 (!%p138_p2), %v1140_v1  ;;  %v1115_v4 = vld [vmem:[%s1355_s1 + $0x8] sm:$0xff] (!%p138_p2)   ;;  %vm267_vm1 = vcmask (!%p138_p2), 261120   ;;  %v1119_v5 = vld [vmem:[%s1355_s1 + $0x30] sm:$0xff] (!%p138_p2)   ;;  %v1123_v12 = vld [vmem:[%s1355_s1 + $0x38] sm:$0xff] (!%p138_p2)   ;;  %vm645_vm3 = vcmask (!%p138_p2), 1046528  }
   0x7   : > { %1005 = vmatpush3.bf16.msra.mxu0 (!%p138_p2), %v1112_v0  ;;  %1032 = vmatprep.mubr.msk.bf16.mxu1 (!%p138_p2), %vm1141_vm0, %v1140_v1  ;;  %vm215_vm2 = vsmask.f32 (!%p138_p2), 7424  ;;  %v1118_v16 = vld [vmem:[%s1355_s1 + $0x20] sm:$0xff] (!%p138_p2)   ;;  %v1122_v23 = vld [vmem:[%s1355_s1 + $0x28] sm:$0xff] (!%p138_p2)   ;;  %vm843_vm5 = vcmask (!%p138_p2), 257024  }
   0x8   : > { %1029 = vmatpush3.bf16.msra.mxu1 (!%p138_p2), %v1113_v2  ;;  %1006 = vmatprep.subr.bf16.mxu0 (!%p138_p2), %v1140_v1 }
   0x9   : > { %1030 = vmatprep.subr.bf16.mxu1 (!%p138_p2), %v1140_v1  ;;  %1008 = vmatprep.mubr.msk.bf16.mxu0 (!%p138_p2), %vm1141_vm0, %v1140_v1 }
   0xb   : > { %1007 = vmatpush3.bf16.msra.mxu0 (!%p138_p2), %v1114_v3 }
   0xc   : > { %1031 = vmatpush3.bf16.msra.mxu1 (!%p138_p2), %v1115_v4  ;;  %1052 = vmatprep.subr.bf16.mxu0 (!%p138_p2), %v1140_v1 }
   0xd   : > { %s1359_s13 = smov (!%p161_p3, %s908_s13), 1  ;;  %1076 = vmatprep.subr.bf16.mxu1 %v1140_v1 }
   0xe   : > { %s1100_s22 = smul.u32 48, %s1359_s13 }
   0xf   : > { %s1101_s9 = smul.u32 36, %s1359_s13 }
  0x10   : > { %s1197_s25 = scalar_lea.vmem %s1354_s0, %s1100_s22 }
  0x11   : > { %v1116_v6 = vld [vmem:[%s1197_s25] sm:$0xff]   ;;  %v1117_v7 = vld [vmem:[%s1197_s25 + $0x8] sm:$0xff]   ;;  %v1120_v11 = vld [vmem:[%s1197_s25 + $0x10] sm:$0xff]   ;;  %s1318_s14 = scalar_lea.vmem %s1357_s3, %s1101_s9 }
  0x12   : > { %1033 = vmatmul.mubr.msk.bf16.vlgmr.msra.gmra.mrb[0].mxu1 %vm267_vm1, %v1116_v6  ;;  %v217_v8 = vshrl.u32 %v1116_v6, 16  ;;  %v219_v9 = vshll.u32 %v1116_v6, 16  ;;  %v224_v10 = vshll.u32 %v1117_v7, 16  ;;  %v228_v17 = vshrl.u32 %v1117_v7, 16  ;;  %v1121_v22 = vld [vmem:[%s1197_s25 + $0x18] sm:$0xff]   ;;  %v1127_v43 = vld [vmem:[%s1197_s25 + $0xc] sm:$0xff]  }
  0x13   : > { %1077 = vmatpush3.bf16.msra.mxu1 %v1119_v5  ;;  %1036 = vmatprep.mubr.msk.bf16.mxu1 %vm1141_vm0, %v1140_v1  ;;  %v232_v18 = vshll.u32 %v1120_v11, 16  ;;  %v236_v25 = vshrl.u32 %v1120_v11, 16  ;;  %v240_v26 = vshll.u32 %v1121_v22, 16  ;;  %v180_v27 = vld [vmem:[%s1197_s25 + $0x20] sm:$0xf]  ;;  %v244_v33 = vshrl.u32 %v1121_v22, 16 }
  0x14   : > { %v221_v13 = vrot.slane %v219_v9, 1  ;;  %1078 = vmatprep.subr.bf16.mxu1 %v1140_v1  ;;  %v226_v14 = vrot.slane %v224_v10, 1  ;;  %v185_v28 = vld [vmem:[%s1197_s25 + $0x24] sm:$0x1]  ;;  %v452_v38 = vld [vmem:[%s1197_s25 + $0x8] sm:$0xf]  ;;  %v927_v42 = vcombine.low %v180_v27, %v180_v27 }
  0x15   : > { %v234_v21 = vrot.slane %v232_v18, 1  ;;  %v242_v30 = vrot.slane %v240_v26, 1  ;;  %v919_v31 = vcombine.low %v180_v27, %v185_v28  ;;  %v451_v37 = vld [vmem:[%s1197_s25 + $0x4] sm:$0xf]  ;;  %v647_v48 = vrot.slane %v1127_v43, 1  ;;  %v1129_v54 = vld [vmem:[%s1197_s25 + $0x14] sm:$0xff]  }
  0x16   : > { %v222_v15 = vor.u32 %v221_v13, %v217_v8  ;;  %v230_v20 = vor.u32 %v228_v17, %v226_v14  ;;  %v637_v39 = vld [vmem:[%s1197_s25 + $0x4] sm:$0xe]  ;;  %v935_v41 = vcombine.low %v451_v37, %v452_v38  ;;  %v498_v52 = vshll.u32 %v1127_v43, 16  ;;  %v1130_v62 = vld [vmem:[%s1197_s25 + $0x1c] sm:$0xff]  }
  0x17   : > { %1079 = vmatpush3.bf16.msra.mxu1 %v1123_v12  ;;  %v238_v29 = vor.u32 %v236_v25, %v234_v21  ;;  %v248_v34 = vshll.u32 %v919_v31, 16  ;;  %v246_v35 = vor.u32 %v244_v33, %v242_v30  ;;  %v947_v44 = vcombine.low %v637_v39, %v452_v38 }
  0x18   : > { %v227_v19 = vsel %vm215_vm2, %v222_v15, %v226_v14  ;;  %v235_v24 = vsel %vm215_vm2, %v230_v20, %v234_v21  ;;  %v252_v45 = vshrl.u32 %v919_v31, 16  ;;  %v493_v46 = vshll.u32 %v935_v41, 16 }
  0x19   : > { %1009 = vmatmul.mubr.msk.bf16.vlgmr.msra.gmra.mrb[0].mxu0 %vm267_vm1, %v227_v19  ;;  %v243_v32 = vsel %vm215_vm2, %v238_v29, %v242_v30  ;;  %v250_v36 = vrot.slane %v248_v34, 1  ;;  %v646_v47 = vrot.slane %v947_v44, 1  ;;  %v491_v50 = vshrl.u32 %v935_v41, 16 }
  0x1a   : > { %1053 = vmatpush3.bf16.msra.mxu0 %v1118_v16  ;;  %1012 = vmatprep.mubr.msk.bf16.mxu0 %vm1141_vm0, %v1140_v1  ;;  %v495_v51 = vrot.slane %v493_v46, 1  ;;  %v500_v56 = vrot.slane %v498_v52, 1  ;;  %v649_v57 = vrot.slane %v1129_v54, 1  ;;  %v502_v59 = vshrl.u32 %v1127_v43, 16 }
  0x1b   : > { %1037 = vmatmul.mubr.msk.bf16.gmra.mrb[4].mxu1 %vm267_vm1, %v1117_v7  ;;  %1054 = vmatprep.subr.bf16.mxu0 %v1140_v1  ;;  %v251_v40 = vsel %vm215_vm2, %v246_v35, %v250_v36  ;;  %v254_v49 = vor.u32 %v252_v45, %v250_v36  ;;  %v648_v53 = vsel %vm645_vm3, %v646_v47, %v647_v48  ;;  %v506_v60 = vshll.u32 %v1129_v54, 16  ;;  %v1131_v7 = vld [vmem:[%s1197_s25 + $0x24] sm:$0x1f]  }
  0x1c   : > { %1040 = vmatprep.mubr.msk.bf16.mxu1 %vm1141_vm0, %v1140_v1  ;;  %v496_v55 = vor.u32 %v495_v51, %v491_v50  ;;  %v650_v61 = vsel %vm645_vm3, %v647_v48, %v649_v57  ;;  %v504_v63 = vor.u32 %v502_v59, %v500_v56  ;;  %v651_v2 = vrot.slane %v1130_v62, 1 }
  0x1d   : > { %v508_v0 = vrot.slane %v506_v60, 1  ;;  %v510_v4 = vshrl.u32 %v1129_v54, 16  ;;  %v514_v5 = vshll.u32 %v1130_v62, 16  ;;  %v653_v10 = vrot.slane %v1131_v7, 1 }
  0x1e   : > { %1055 = vmatpush3.bf16.msra.mxu0 %v1122_v23  ;;  %v501_v58 = vsel %vm215_vm2, %v496_v55, %v500_v56  ;;  %v652_v6 = vsel %vm645_vm3, %v649_v57, %v651_v2  ;;  %v518_v12 = vshrl.u32 %v1130_v62, 16  ;;  %v522_v13 = vshll.u32 %v1131_v7, 16 }
  0x1f   : > { %v509_v3 = vsel %vm215_vm2, %v504_v63, %v508_v0  ;;  %v512_v8 = vor.u32 %v510_v4, %v508_v0  ;;  %v516_v9 = vrot.slane %v514_v5, 1  ;;  %v654_v14 = vsel %vm645_vm3, %v651_v2, %v653_v10 }
  0x20   : > { %v524_v16 = vrot.slane %v522_v13, 1  ;;  %v526_v18 = vshrl.u32 %v1131_v7, 16 }
  0x21   : > { %1013 = vmatmul.mubr.msk.bf16.gmra.mrb[4].mxu0 %vm267_vm1, %v235_v24  ;;  %v520_v15 = vor.u32 %v518_v12, %v516_v9  ;;  %v1310_v12 = vld [vmem:[%s1356_s2] ss:$0 sm:$0xff] }
  0x22   : > { %1016 = vmatprep.mubr.msk.bf16.mxu0 %vm1141_vm0, %v1140_v1  ;;  %v528_v19 = vor.u32 %v526_v18, %v524_v16 }
  0x23   : > { %1041 = vmatmul.mubr.msk.bf16.gmra.mrb[8].mxu1 %vm267_vm1, %v1120_v11  ;;  %v517_v11 = vsel %vm215_vm2, %v512_v8, %v516_v9  ;;  %v525_v17 = vsel %vm215_vm2, %v520_v15, %v524_v16 }
  0x24   : > { %1044 = vmatprep.mubr.msk.bf16.mxu1 %vm1141_vm0, %v1140_v1 }
  0x29   : > { %1017 = vmatmul.mubr.msk.bf16.gmra.mrb[8].mxu0 %vm267_vm1, %v243_v32 }
  0x2a   : > { %1020 = vmatprep.mubr.msk.bf16.mxu0 %vm1141_vm0, %v1140_v1 }
  0x2b   : > { %1045 = vmatmul.mubr.msk.bf16.gmra.mrb[12].mxu1 %vm267_vm1, %v1121_v22 }
  0x2c   : > { %1048 = vmatprep.mubr.msk.bf16.mxu1 %vm1141_vm0, %v1140_v1 }
  0x31   : > { %1021 = vmatmul.mubr.msk.bf16.gmra.mrb[12].mxu0 %vm267_vm1, %v251_v40 }
  0x32   : > { %1024 = vmatprep.mubr.msk.bf16.mxu0 %vm1141_vm0, %v1140_v1 }
  0x33   : > { %1049 = vmatmul.mubr.msk.bf16.gmra.mrb[16].mxu1 %vm267_vm1, %v927_v42 }
  0x34   : > { %1080 = vmatprep.mubr.msk.bf16.mxu1 %vm1141_vm0, %v1140_v1 }
  0x39   : > { %1025 = vmatmul.mubr.msk.bf16.gmra.mrb[16].mxu0 %vm267_vm1, %v254_v49 }
  0x3a   : > { %1056 = vmatprep.mubr.msk.bf16.mxu0 %vm1141_vm0, %v1140_v1 }
  0x3b   : > { %1081 = vmatmul.mubr.msk.bf16.vlgmr.msra.gmra.mrb[20].mxu1 %vm267_vm1, %v648_v53 }
  0x3c   : > { %1084 = vmatprep.mubr.msk.bf16.mxu1 %vm1141_vm0, %v1140_v1 }
  0x41   : > { %1057 = vmatmul.mubr.msk.bf16.vlgmr.msra.gmra.mrb[20].mxu0 %vm267_vm1, %v501_v58 }
  0x42   : > { %1060 = vmatprep.mubr.msk.bf16.mxu0 %vm1141_vm0, %v1140_v1 }
  0x43   : > { %1085 = vmatmul.mubr.msk.bf16.gmra.mrb[24].mxu1 %vm267_vm1, %v650_v61 }
  0x44   : > { %1088 = vmatprep.mubr.msk.bf16.mxu1 %vm1141_vm0, %v1140_v1 }
  0x49   : > { %1061 = vmatmul.mubr.msk.bf16.gmra.mrb[24].mxu0 %vm267_vm1, %v509_v3 }
  0x4a   : > { %1064 = vmatprep.mubr.msk.bf16.mxu0 %vm1141_vm0, %v1140_v1 }
  0x4b   : > { %1089 = vmatmul.mubr.msk.bf16.gmra.mrb[28].mxu1 %vm267_vm1, %v652_v6 }
  0x4c   : > { %1092 = vmatprep.mubr.msk.bf16.mxu1 %vm1141_vm0, %v1140_v1 }
  0x51   : > { %1065 = vmatmul.mubr.msk.bf16.gmra.mrb[28].mxu0 %vm267_vm1, %v517_v11 }
  0x52   : > { %1068 = vmatprep.mubr.msk.bf16.mxu0 %vm1141_vm0, %v1140_v1 }
  0x53   : > { %1093 = vmatmul.mubr.msk.bf16.gmra.mrb[32].mxu1 %vm267_vm1, %v654_v14 }
  0x54   : > { %1096 = vmatprep.mubr.msk.bf16.mxu1 %vm1141_vm0, %v1140_v1 }
  0x59   : > { %1069 = vmatmul.mubr.msk.bf16.gmra.mrb[32].mxu0 %vm267_vm1, %v525_v17 }
  0x5a   : > { %1072 = vmatprep.mubr.msk.bf16.mxu0 %vm1141_vm0, %v1140_v1 }
  0x5b   : > { %1097 = vmatmul.mubr.msk.bf16.gmra.mrb[36].mxu1 %vm267_vm1, %v653_v10 }
  0x61   : > { %1073 = vmatmul.mubr.msk.bf16.gmra.mrb[36].mxu0 %vm267_vm1, %v528_v19 }
  0xe5   : > { %v413_v20 = vpop.f32.mrb[0].mxu1 }
  0xe6   : > { %v1034_v21 = vpop.f32.mrb[1].mxu1 }
  0xe7   : > { %v416_v22 = vpop.f32.mrb[2].mxu1 }
  0xe8   : > { %v1035_v23 = vpop.f32.mrb[3].mxu1 }
  0xec   : > { %v317_v24 = vpop.f32.mrb[0].mxu0 }
  0xed   : > { %v414_v25 = vadd.f32 %v413_v20, %v317_v24  ;;  %v1010_v26 = vpop.f32.mrb[1].mxu0 }
  0xee   : > { %v320_v27 = vpop.f32.mrb[2].mxu0  ;;  %v421_v28 = vpop.f32.mrb[4].mxu1 }
  0xef   : > { %v417_v29 = vadd.f32 %v416_v22, %v320_v27  ;;  %v1011_v30 = vpop.f32.mrb[3].mxu0  ;;  %v1038_v31 = vpop.f32.mrb[5].mxu1 }
  0xf0   : > { %v424_v32 = vpop.f32.mrb[6].mxu1 }
  0xf1   : > { %v1039_v33 = vpop.f32.mrb[7].mxu1 }
  0xf4   : > { %v325_v1 = vpop.f32.mrb[4].mxu0 }
  0xf5   : > { %v422_v34 = vadd.f32 %v421_v28, %v325_v1  ;;  %v1014_v35 = vpop.f32.mrb[5].mxu0 }
  0xf6   : > { %v328_v36 = vpop.f32.mrb[6].mxu0  ;;  %v429_v37 = vpop.f32.mrb[8].mxu1 }
  0xf7   : > { %v1295_v38 = vadd.f32 %v424_v32, %v328_v36  ;;  %v1015_v39 = vpop.f32.mrb[7].mxu0  ;;  %v1042_v40 = vpop.f32.mrb[9].mxu1 }
  0xf8   : > { %v432_v41 = vpop.f32.mrb[10].mxu1 }
  0xf9   : > { %v1043_v42 = vpop.f32.mrb[11].mxu1 }
  0xfc   : > { %v333_v43 = vpop.f32.mrb[8].mxu0 }
  0xfd   : > { %v1297_v44 = vadd.f32 %v429_v37, %v333_v43  ;;  %v1018_v45 = vpop.f32.mrb[9].mxu0 }
  0xfe   : > { %v336_v46 = vpop.f32.mrb[10].mxu0  ;;  %v437_v47 = vpop.f32.mrb[12].mxu1 }
  0xff   : > { %v1299_v48 = vadd.f32 %v432_v41, %v336_v46  ;;  %v1019_v49 = vpop.f32.mrb[11].mxu0  ;;  %v1046_v50 = vpop.f32.mrb[13].mxu1 }
 0x100   : > { %v440_v51 = vpop.f32.mrb[14].mxu1 }
 0x101   : > { %v1047_v52 = vpop.f32.mrb[15].mxu1 }
 0x104   : > { %v341_v53 = vpop.f32.mrb[12].mxu0 }
 0x105   : > { %v1301_v54 = vadd.f32 %v437_v47, %v341_v53  ;;  %v1022_v55 = vpop.f32.mrb[13].mxu0 }
 0x106   : > { %v344_v56 = vpop.f32.mrb[14].mxu0  ;;  %v445_v57 = vpop.f32.mrb[16].mxu1 }
 0x107   : > { %v1303_v58 = vadd.f32 %v440_v51, %v344_v56  ;;  %v1023_v59 = vpop.f32.mrb[15].mxu0  ;;  %v1050_v60 = vpop.f32.mrb[17].mxu1 }
 0x108   : > { %v448_v61 = vpop.f32.mrb[18].mxu1 }
 0x109   : > { %v1051_v62 = vpop.f32.mrb[19].mxu1 }
 0x10c   : > { %v349_v63 = vpop.f32.mrb[16].mxu0 }
 0x10d   : > { %v1305_v0 = vadd.f32 %v445_v57, %v349_v63  ;;  %v1026_v2 = vpop.f32.mrb[17].mxu0 }
 0x10e   : > { %v352_v3 = vpop.f32.mrb[18].mxu0  ;;  %v716_v4 = vpop.f32.mrb[20].mxu1 }
 0x10f   : > { %v1027_v5 = vpop.f32.mrb[19].mxu0  ;;  %v1082_v6 = vpop.f32.mrb[21].mxu1 }
 0x110   : > { %v719_v7 = vpop.f32.mrb[22].mxu1 }
 0x111   : > { %v1083_v8 = vpop.f32.mrb[23].mxu1 }
 0x114   : > { %v590_v9 = vpop.f32.mrb[20].mxu0 }
 0x115   : > { %v628_v10 = vadd.f32 %v590_v9, %v414_v25  ;;  %v1058_v11 = vpop.f32.mrb[21].mxu0 }
 0x116   : > { %v593_v13 = vpop.f32.mrb[22].mxu0  ;;  %v724_v14 = vpop.f32.mrb[24].mxu1 }
 0x117   : > { %v754_v15 = vadd.f32 %v716_v4, %v628_v10  ;;  %v629_v16 = vadd.f32 %v593_v13, %v417_v29  ;;  %v1059_v17 = vpop.f32.mrb[23].mxu0  ;;  %v1086_v18 = vpop.f32.mrb[25].mxu1 }
 0x118   : > { %v727_v19 = vpop.f32.mrb[26].mxu1 }
 0x119   : > { %v770_v20 = vadd.f32 %v1310_v12, %v754_v15  ;;  %v755_v21 = vadd.f32 %v719_v7, %v629_v16  ;;  %v1087_v22 = vpop.f32.mrb[27].mxu1 }
 0x11b   : > { %vm779_vm4 = vcmp.gt.f32.partialorder %v770_v20, 0.0  ;;  %v788_v23 = vmul.f32 0.2, %v770_v20  ;;  %v771_v24 = vadd.f32 %v1310_v12, %v755_v21 }
 0x11c   : > { %v598_v25 = vpop.f32.mrb[24].mxu0 }
 0x11d   : > { %v797_v26 = vsel %vm779_vm4, %v770_v20, %v788_v23  ;;  %vm780_vm6 = vcmp.gt.f32.partialorder %v771_v24, 0.0  ;;  %v789_v27 = vmul.f32 0.2, %v771_v24  ;;  %v630_v28 = vadd.f32 %v598_v25, %v422_v34  ;;  %v1062_v29 = vpop.f32.mrb[25].mxu0 }
 0x11e   : > { %v967_v30 = vpack.c.bf16 %v797_v26, %v797_v26  ;;  %v601_v31 = vpop.f32.mrb[26].mxu0  ;;  %v732_v32 = vpop.f32.mrb[28].mxu1 }
 0x11f   : > { %v798_v33 = vsel %vm780_vm6, %v771_v24, %v789_v27  ;;  %v756_v1 = vadd.f32 %v724_v14, %v630_v28  ;;  %v631_v35 = vadd.f32 %v601_v31, %v1295_v38  ;;  %v1063_v36 = vpop.f32.mrb[27].mxu0  ;;  %v1090_v37 = vpop.f32.mrb[29].mxu1 }
 0x120   : > { %844 = vst.msk [vmem:[%s1318_s14] sm:$0xf] %vm843_vm5, %v967_v30  ;;  %v968_v39 = vpack.c.bf16 %v798_v33, %v798_v33  ;;  %v735_v40 = vpop.f32.mrb[30].mxu1 }
 0x121   : > { %v772_v41 = vadd.f32 %v1310_v12, %v756_v1  ;;  %v757_v42 = vadd.f32 %v727_v19, %v631_v35  ;;  %v1091_v43 = vpop.f32.mrb[31].mxu1 }
 0x122   : > { %845 = vst.msk [vmem:[%s1318_s14 + $0x4] sm:$0xf] %vm843_vm5, %v968_v39 }
 0x123   : > { %vm781_vm7 = vcmp.gt.f32.partialorder %v772_v41, 0.0  ;;  %v790_v34 = vmul.f32 0.2, %v772_v41  ;;  %v773_v45 = vadd.f32 %v1310_v12, %v757_v42 }
 0x124   : > { %v606_v46 = vpop.f32.mrb[28].mxu0 }
 0x125   : > { %v799_v47 = vsel %vm781_vm7, %v772_v41, %v790_v34  ;;  %vm782_vm8 = vcmp.gt.f32.partialorder %v773_v45, 0.0  ;;  %v791_v38 = vmul.f32 0.2, %v773_v45  ;;  %v632_v49 = vadd.f32 %v606_v46, %v1297_v44  ;;  %v1066_v50 = vpop.f32.mrb[29].mxu0 }
 0x126   : > { %v969_v51 = vpack.c.bf16 %v799_v47, %v799_v47  ;;  %v609_v52 = vpop.f32.mrb[30].mxu0  ;;  %v740_v53 = vpop.f32.mrb[32].mxu1 }
 0x127   : > { %v800_v55 = vsel %vm782_vm8, %v773_v45, %v791_v38  ;;  %v758_v56 = vadd.f32 %v732_v32, %v632_v49  ;;  %v633_v57 = vadd.f32 %v609_v52, %v1299_v48  ;;  %v1067_v59 = vpop.f32.mrb[31].mxu0  ;;  %v1094_v60 = vpop.f32.mrb[33].mxu1 }
 0x128   : > { %846 = vst.msk [vmem:[%s1318_s14 + $0x8] sm:$0xf] %vm843_vm5, %v969_v51  ;;  %v970_v61 = vpack.c.bf16 %v800_v55, %v800_v55  ;;  %v743_v62 = vpop.f32.mrb[34].mxu1 }
 0x129   : > { %v774_v63 = vadd.f32 %v1310_v12, %v758_v56  ;;  %v759_v2 = vadd.f32 %v735_v40, %v633_v57  ;;  %v1095_v3 = vpop.f32.mrb[35].mxu1 }
 0x12a   : > { %847 = vst.msk [vmem:[%s1318_s14 + $0xc] sm:$0xf] %vm843_vm5, %v970_v61 }
 0x12b   : > { %vm783_vm9 = vcmp.gt.f32.partialorder %v774_v63, 0.0  ;;  %v792_v44 = vmul.f32 0.2, %v774_v63  ;;  %v775_v4 = vadd.f32 %v1310_v12, %v759_v2 }
 0x12c   : > { %v614_v5 = vpop.f32.mrb[32].mxu0 }
 0x12d   : > { %v801_v6 = vsel %vm783_vm9, %v774_v63, %v792_v44  ;;  %vm784_vm10 = vcmp.gt.f32.partialorder %v775_v4, 0.0  ;;  %v793_v48 = vmul.f32 0.2, %v775_v4  ;;  %v634_v7 = vadd.f32 %v614_v5, %v1301_v54  ;;  %v1070_v8 = vpop.f32.mrb[33].mxu0 }
 0x12e   : > { %v971_v9 = vpack.c.bf16 %v801_v6, %v801_v6  ;;  %v617_v10 = vpop.f32.mrb[34].mxu0  ;;  %v748_v11 = vpop.f32.mrb[36].mxu1 }
 0x12f   : > { %v802_v13 = vsel %vm784_vm10, %v775_v4, %v793_v48  ;;  %v760_v14 = vadd.f32 %v740_v53, %v634_v7  ;;  %v635_v15 = vadd.f32 %v617_v10, %v1303_v58  ;;  %v1071_v16 = vpop.f32.mrb[35].mxu0  ;;  %v1098_v17 = vpop.f32.mrb[37].mxu1 }
 0x130   : > { %848 = vst.msk [vmem:[%s1318_s14 + $0x10] sm:$0xf] %vm843_vm5, %v971_v9  ;;  %v972_v18 = vpack.c.bf16 %v802_v13, %v802_v13  ;;  %v751_v19 = vpop.f32.mrb[38].mxu1 }
 0x131   : > { %v776_v20 = vadd.f32 %v1310_v12, %v760_v14  ;;  %v761_v21 = vadd.f32 %v743_v62, %v635_v15  ;;  %v1099_v22 = vpop.f32.mrb[39].mxu1 }
 0x132   : > { %849 = vst.msk [vmem:[%s1318_s14 + $0x14] sm:$0xf] %vm843_vm5, %v972_v18 }
 0x133   : > { %vm785_vm11 = vcmp.gt.f32.partialorder %v776_v20, 0.0  ;;  %v794_v54 = vmul.f32 0.2, %v776_v20  ;;  %v777_v23 = vadd.f32 %v1310_v12, %v761_v21 }
 0x134   : > { %v622_v24 = vpop.f32.mrb[36].mxu0 }
 0x135   : > { %v803_v58 = vsel %vm785_vm11, %v776_v20, %v794_v54  ;;  %vm786_vm12 = vcmp.gt.f32.partialorder %v777_v23, 0.0  ;;  %v795_v25 = vmul.f32 0.2, %v777_v23  ;;  %v636_v26 = vadd.f32 %v622_v24, %v1305_v0  ;;  %v1074_v27 = vpop.f32.mrb[37].mxu0 }
 0x136   : > { %v973_v28 = vpack.c.bf16 %v803_v58, %v803_v58  ;;  %v625_v29 = vpop.f32.mrb[38].mxu0 }
 0x137   : > { %v804_v30 = vsel %vm786_vm12, %v777_v23, %v795_v25  ;;  %v762_v31 = vadd.f32 %v748_v11, %v636_v26  ;;  %v1075_v32 = vpop.f32.mrb[39].mxu0 }
 0x138   : > { %850 = vst.msk [vmem:[%s1318_s14 + $0x18] sm:$0xf] %vm843_vm5, %v973_v28  ;;  %v974_v33 = vpack.c.bf16 %v804_v30, %v804_v30 }
 0x139   : > { %v778_v1 = vadd.f32 %v1310_v12, %v762_v31 }
 0x13a   : > { %851 = vst.msk [vmem:[%s1318_s14 + $0x1c] sm:$0xf] %vm843_vm5, %v974_v33 }
 0x13b   : > { %vm787_vm13 = vcmp.gt.f32.partialorder %v778_v1, 0.0  ;;  %v796_v35 = vmul.f32 0.2, %v778_v1 }
 0x13d   : > { %v805_v36 = vsel %vm787_vm13, %v778_v1, %v796_v35 }
 0x13e   : > { %v975_v37 = vpack.c.bf16 %v805_v36, %v805_v36 }
 0x140   : > { %852 = vst.msk [vmem:[%s1318_s14 + $0x20] sm:$0xf] %vm843_vm5, %v975_v37 }
 0x141 PF: > { %s13_s12 = sadd.s32 1, %s1138_s12  }
 0x142   : > { %p10_p4 = scmp.ge.s32.totalorder %s13_s12, 4  }
 0x144   :  { %12 = sbr.rel (!%p10_p4) target bundleno = 1 (0x1), region = 62 }

// kernel: discriminator_forward.5
= control target key start
LH: loop header
LB: loop body
LE: loop exit
PB: predicated region body
PF: predicated region fallthrough
CT: control target
= control target key end

     0   :  { %s1117_s20 = smov 0   ;;  %s1256_s0 = inlined_call_operand.vmem [shape: bf16[2,30,128], index: 0, kind: input, shape index: {}]   ;;  %s1257_s1 = inlined_call_operand.vmem [shape: bf16[512,64], index: 1, kind: input, shape index: {}]   ;;  %s1258_s2 = inlined_call_operand.vmem [shape: f32[1,64], index: 2, kind: input, shape index: {}]   ;;  %s1259_s3 = inlined_call_operand.vmem [shape: f32[20,64], index: 3, kind: input, shape index: {}]   ;;  %s1260_s4 = inlined_call_operand.<no memory space> [shape: f32[1,1], index: 4, kind: input, shape index: {}]   ;;  %s1261_s5 = inlined_call_operand.vmem [shape: f32[2,1,1], index: 5, kind: output, shape index: {}]  }
   0x1   :  { %v10_v0 = vstv %s1260_s4 }
   0x2   :  { %11 = vst [vmem:[#allocation2] sm:$0x1] %v10_v0 }
   0x3 LB: > { %s855_s21 = sadd.s32 4294967295, %s1082_s20   ;;  %p859_p0 = scmp.ge.s32.totalorder %s1082_s20, 1  ;;  %s1082_s20 = sphi %s1117_s20, %s17_s20  }
   0x4   : > { %p189_p1 = scmp.lt.s32.totalorder %s1082_s20, 3 }
   0x6   : > { %p190_p2 = pnand %p859_p0, %p189_p1 }
   0x7   : > { %v1034_v1 = vld [vmem:[%s1257_s1 + $0x40] sm:$0xff] (!%p190_p2)   ;;  %v1036_v3 = vld [vmem:[%s1257_s1 + $0x48] sm:$0xff] (!%p190_p2)   ;;  %p215_p3 = scmp.lt.s32.totalorder (!%p190_p2), %s855_s21, 1  ;;  %v1038_v5 = vld [vmem:[%s1257_s1 + $0x50] sm:$0xff] (!%p190_p2)   ;;  %vm268_vm0 = vsmask.f32 (!%p190_p2), 7424 }
   0x8   : > { %193 = sbr.rel (%p190_p2) target bundleno = 539 (0x21b), region = 40  ;;  %v1035_v2 = vld [vmem:[%s1257_s1] sm:$0xff] (!%p190_p2)   ;;  %944 = vmatprep.subr.bf16.mxu0 (!%p190_p2), %v1034_v1  ;;  %v1037_v4 = vld [vmem:[%s1257_s1 + $0x8] sm:$0xff] (!%p190_p2)   ;;  %v1039_v6 = vld [vmem:[%s1257_s1 + $0x10] sm:$0xff] (!%p190_p2)   ;;  %vm652_vm1 = vcmask (!%p190_p2), 1044480   ;;  %vm782_vm6 = vcmask (!%p190_p2), 523264  }
   0x9   : > { %964 = vmatprep.subr.bf16.mxu1 (!%p190_p2), %v1035_v2  ;;  %945 = vmatpush3.bf16.msra.mxu0 (!%p190_p2), %v1034_v1  ;;  %v1040_v7 = vld [vmem:[%s1257_s1 + $0x58] sm:$0xff] (!%p190_p2)   ;;  %v1042_v9 = vld [vmem:[%s1257_s1 + $0x60] sm:$0xff] (!%p190_p2)   ;;  %v1044_v11 = vld [vmem:[%s1257_s1 + $0x68] sm:$0xff] (!%p190_p2)   ;;  %vm513_vm2 = vsmask.f32 (!%p190_p2), 5376  ;;  %vm786_vm7 = vcmask (!%p190_p2), 519168  }
   0xa   : > { %965 = vmatpush3.bf16.msra.mxu1 (!%p190_p2), %v1035_v2  ;;  %946 = vmatprep.subr.bf16.mxu0 (!%p190_p2), %v1036_v3  ;;  %v1041_v8 = vld [vmem:[%s1257_s1 + $0x18] sm:$0xff] (!%p190_p2)   ;;  %v1043_v10 = vld [vmem:[%s1257_s1 + $0x20] sm:$0xff] (!%p190_p2)   ;;  %v1045_v12 = vld [vmem:[%s1257_s1 + $0x28] sm:$0xff] (!%p190_p2)   ;;  %vm806_vm8 = vcmask (!%p190_p2), 0  }
   0xb   : > { %966 = vmatprep.subr.bf16.mxu1 (!%p190_p2), %v1037_v4  ;;  %v1046_v15 = vld [vmem:[%s1257_s1 + $0x70] sm:$0xff] (!%p190_p2)   ;;  %v1048_v23 = vld [vmem:[%s1257_s1 + $0x78] sm:$0xff] (!%p190_p2)   ;;  %v1053_v27 = vld [vmem:[%s1257_s1 + $0x80] sm:$0xff] (!%p190_p2)  }
   0xc   : > { %v1047_v16 = vld [vmem:[%s1257_s1 + $0x30] sm:$0xff] (!%p190_p2)   ;;  %v1049_v24 = vld [vmem:[%s1257_s1 + $0x38] sm:$0xff] (!%p190_p2)   ;;  %v1054_v29 = vld [vmem:[%s1257_s1 + $0xc0] sm:$0xff] (!%p190_p2)  }
   0xd   : > { %947 = vmatpush3.bf16.msra.mxu0 (!%p190_p2), %v1036_v3  ;;  %v1055_v31 = vld [vmem:[%s1257_s1 + $0x88] sm:$0xff] (!%p190_p2)   ;;  %v1057_v33 = vld [vmem:[%s1257_s1 + $0x90] sm:$0xff] (!%p190_p2)   ;;  %v1059_v46 = vld [vmem:[%s1257_s1 + $0x98] sm:$0xff] (!%p190_p2)  }
   0xe   : > { %967 = vmatpush3.bf16.msra.mxu1 (!%p190_p2), %v1037_v4  ;;  %948 = vmatprep.subr.bf16.mxu0 (!%p190_p2), %v1038_v5  ;;  %v1056_v32 = vld [vmem:[%s1257_s1 + $0xc8] sm:$0xff] (!%p190_p2)   ;;  %v1058_v38 = vld [vmem:[%s1257_s1 + $0xd0] sm:$0xff] (!%p190_p2)   ;;  %v1060_v51 = vld [vmem:[%s1257_s1 + $0xd8] sm:$0xff] (!%p190_p2)  }
   0xf   : > { %s1263_s21 = smov (!%p215_p3, %s855_s21), 1  ;;  %968 = vmatprep.subr.bf16.mxu1 %v1039_v6  ;;  %v1061_v56 = vld [vmem:[%s1257_s1 + $0xa0] sm:$0xff]   ;;  %v1063_v59 = vld [vmem:[%s1257_s1 + $0xa8] sm:$0xff]   ;;  %v1065_v61 = vld [vmem:[%s1257_s1 + $0xb0] sm:$0xff]  }
  0x10   : > { %s903_s12 = sshll.u32 %s1263_s21, 4  ;;  %v1062_v58 = vld [vmem:[%s1257_s1 + $0xe0] sm:$0xff]   ;;  %v1064_v60 = vld [vmem:[%s1257_s1 + $0xe8] sm:$0xff]   ;;  %v1066_v62 = vld [vmem:[%s1257_s1 + $0xf0] sm:$0xff]   ;;  %s222_s28 = scalar_lea.vmem %s1261_s5, %s1263_s21 }
  0x11   : > { %949 = vmatpush3.bf16.msra.mxu0 %v1038_v5  ;;  %s1161_s19 = scalar_lea.vmem %s1256_s0, %s903_s12  ;;  %v1067_v63 = vld [vmem:[%s1257_s1 + $0xb8] sm:$0xff]  }
  0x12   : > { %969 = vmatpush3.bf16.msra.mxu1 %v1039_v6  ;;  %950 = vmatprep.subr.bf16.mxu0 %v1040_v7  ;;  %v1050_v13 = vld [vmem:[%s1161_s19] sm:$0xff]   ;;  %v1051_v14 = vld [vmem:[%s1161_s19 + $0x8] ss:$0 sps:$4 sm:$0x77]   ;;  %v1068_v0 = vld [vmem:[%s1257_s1 + $0xf8] sm:$0xff]  }
  0x13   : > { %970 = vmatprep.subr.bf16.mxu1 %v1041_v8  ;;  %v270_v17 = vshrl.u32 %v1050_v13, 16  ;;  %v272_v18 = vshll.u32 %v1050_v13, 16  ;;  %v277_v19 = vshll.u32 %v1051_v14, 16  ;;  %980 = vmatprep.mubr.bf16.mxu1 %v1050_v13  ;;  %v281_v26 = vshrl.u32 %v1051_v14, 16  ;;  %v483_v34 = vld [vmem:[%s1161_s19] sm:$0xc] }
  0x14   : > { %v1052_v28 = vld [vmem:[%s1161_s19 + $0x8] ss:$0 sps:$4 sm:$0x33]   ;;  %v484_v35 = vld [vmem:[%s1161_s19 + $0x4] sm:$0xf] }
  0x15   : > { %951 = vmatpush3.bf16.msra.mxu0 %v1040_v7  ;;  %v274_v20 = vrot.slane %v272_v18, 1  ;;  %v279_v21 = vrot.slane %v277_v19, 1  ;;  %v881_v36 = vcombine.low %v483_v34, %v484_v35  ;;  %v1070_v37 = vld [vmem:[%s1161_s19 + $0x8] sm:$0x1f]   ;;  %v632_v39 = vld [vmem:[%s1161_s19] sm:$0x8] }
  0x16   : > { %971 = vmatpush3.bf16.msra.mxu1 %v1041_v8  ;;  %952 = vmatprep.subr.bf16.mxu0 %v1042_v9  ;;  %v523_v42 = vshrl.u32 %v1070_v37, 16  ;;  %v526_v43 = vshll.u32 %v1070_v37, 16  ;;  %v891_v44 = vcombine.low %v632_v39, %v484_v35  ;;  %v654_v45 = vrot.slane %v1070_v37, 3  ;;  %v778_v37 = vld [vmem:[%s1259_s3 + $0x10] sm:$0xf] }
  0x17   : > { %972 = vmatprep.subr.bf16.mxu1 %v1043_v10  ;;  %v275_v22 = vor.u32 %v274_v20, %v270_v17  ;;  %v283_v30 = vor.u32 %v281_v26, %v279_v21  ;;  %v515_v40 = vshrl.u32 %v881_v36, 16  ;;  %v518_v41 = vshll.u32 %v881_v36, 16  ;;  %v777_v36 = vld [vmem:[%s1259_s3 + $0x8] sm:$0xff] }
  0x18   : > { %v525_v49 = vrot.slane %v523_v42, 2  ;;  %v528_v50 = vrot.slane %v526_v43, 3  ;;  %v653_v52 = vrot.slane %v891_v44, 3 }
  0x19   : > { %953 = vmatpush3.bf16.msra.mxu0 %v1042_v9  ;;  %v280_v25 = vsel %vm268_vm0, %v275_v22, %v279_v21  ;;  %v517_v47 = vrot.slane %v515_v40, 2  ;;  %v520_v48 = vrot.slane %v518_v41, 3 }
  0x1a   : > { %973 = vmatpush3.bf16.msra.mxu1 %v1043_v10  ;;  %954 = vmatprep.subr.bf16.mxu0 %v1044_v11  ;;  %v529_v54 = vor.u32 %v528_v50, %v525_v49  ;;  %v655_v55 = vsel %vm652_vm1, %v653_v52, %v654_v45 }
  0x1b   : > { %974 = vmatprep.subr.bf16.mxu1 %v1045_v12  ;;  %960 = vmatprep.mubr.bf16.mxu0 %v280_v25  ;;  %v521_v53 = vor.u32 %v520_v48, %v517_v47 }
  0x1d   : > { %955 = vmatpush3.bf16.msra.mxu0 %v1044_v11  ;;  %v530_v57 = vsel %vm513_vm2, %v521_v53, %v529_v54 }
  0x1e   : > { %975 = vmatpush3.bf16.msra.mxu1 %v1045_v12  ;;  %956 = vmatprep.subr.bf16.mxu0 %v1046_v15 }
  0x1f   : > { %976 = vmatprep.subr.bf16.mxu1 %v1047_v16 }
  0x21   : > { %957 = vmatpush3.bf16.msra.mxu0 %v1046_v15 }
  0x22   : > { %977 = vmatpush3.bf16.msra.mxu1 %v1047_v16  ;;  %958 = vmatprep.subr.bf16.mxu0 %v1048_v23  ;;  %v900_v16 = vld [vmem:[%s1258_s2] ss:$0 sm:$0xff] }
  0x23   : > { %978 = vmatprep.subr.bf16.mxu1 %v1049_v24 }
  0x25   : > { %959 = vmatpush3.bf16.msra.mxu0 %v1048_v23 }
  0x26   : > { %979 = vmatpush3.bf16.msra.mxu1 %v1049_v24  ;;  %984 = vmatprep.subr.bf16.mxu0 %v1053_v27 }
  0x27   : > { %1004 = vmatprep.subr.bf16.mxu1 %v1054_v29 }
  0x28   : > { %961 = vmatmul.mubr.bf16.vlgmr.msra.gmra.mrb[0].mxu0 %v283_v30 }
  0x29   : > { %981 = vmatmul.mubr.bf16.vlgmr.msra.gmra.mrb[0].mxu1 %v1052_v28  ;;  %985 = vmatpush3.bf16.msra.mxu0 %v1053_v27 }
  0x2a   : > { %1005 = vmatpush3.bf16.msra.mxu1 %v1054_v29  ;;  %986 = vmatprep.subr.bf16.mxu0 %v1055_v31 }
  0x2b   : > { %1006 = vmatprep.subr.bf16.mxu1 %v1056_v32  ;;  %1000 = vmatprep.mubr.bf16.mxu0 %v530_v57 }
  0x2c   : > { %1020 = vmatprep.mubr.bf16.mxu1 %v655_v55 }
  0x2d   : > { %987 = vmatpush3.bf16.msra.mxu0 %v1055_v31 }
  0x2e   : > { %1007 = vmatpush3.bf16.msra.mxu1 %v1056_v32  ;;  %988 = vmatprep.subr.bf16.mxu0 %v1057_v33  ;;  %v776_v32 = vld [vmem:[%s1259_s3] sm:$0xff] }
  0x2f   : > { %1008 = vmatprep.subr.bf16.mxu1 %v1058_v38 }
  0x31   : > { %989 = vmatpush3.bf16.msra.mxu0 %v1057_v33 }
  0x32   : > { %1009 = vmatpush3.bf16.msra.mxu1 %v1058_v38  ;;  %990 = vmatprep.subr.bf16.mxu0 %v1059_v46 }
  0x33   : > { %1010 = vmatprep.subr.bf16.mxu1 %v1060_v51 }
  0x35   : > { %991 = vmatpush3.bf16.msra.mxu0 %v1059_v46 }
  0x36   : > { %1011 = vmatpush3.bf16.msra.mxu1 %v1060_v51  ;;  %992 = vmatprep.subr.bf16.mxu0 %v1061_v56 }
  0x37   : > { %1012 = vmatprep.subr.bf16.mxu1 %v1062_v58 }
  0x39   : > { %993 = vmatpush3.bf16.msra.mxu0 %v1061_v56 }
  0x3a   : > { %1013 = vmatpush3.bf16.msra.mxu1 %v1062_v58  ;;  %994 = vmatprep.subr.bf16.mxu0 %v1063_v59 }
  0x3b   : > { %1014 = vmatprep.subr.bf16.mxu1 %v1064_v60 }
  0x3d   : > { %995 = vmatpush3.bf16.msra.mxu0 %v1063_v59 }
  0x3e   : > { %1015 = vmatpush3.bf16.msra.mxu1 %v1064_v60  ;;  %996 = vmatprep.subr.bf16.mxu0 %v1065_v61 }
  0x3f   : > { %1016 = vmatprep.subr.bf16.mxu1 %v1066_v62 }
  0x41   : > { %997 = vmatpush3.bf16.msra.mxu0 %v1065_v61 }
  0x42   : > { %1017 = vmatpush3.bf16.msra.mxu1 %v1066_v62  ;;  %998 = vmatprep.subr.bf16.mxu0 %v1067_v63 }
  0x43   : > { %1018 = vmatprep.subr.bf16.mxu1 %v1068_v0 }
  0x45   : > { %999 = vmatpush3.bf16.msra.mxu0 %v1067_v63 }
  0x46   : > { %1019 = vmatpush3.bf16.msra.mxu1 %v1068_v0 }
  0x48   : > { %1001 = vmatmul.mubr.bf16.vlgmr.msra.gmra.mrb[4].mxu0 %v529_v54  ;;  %v799_v54 = vld [vmem:[#allocation2] sm:$0x1] }
  0x49   : > { %1021 = vmatmul.mubr.bf16.vlgmr.msra.gmra.mrb[4].mxu1 %v654_v45 }
  0xfb   : > { %v962_v1 = vpop.f32.mrb[0].mxu0 }
  0xfc   : > { %v982_v2 = vpop.f32.mrb[0].mxu1  ;;  %v368_v3 = vpop.f32.mrb[1].mxu0 }
  0xfd   : > { %v478_v4 = vadd.f32 %v982_v2, %v962_v1  ;;  %v469_v5 = vpop.f32.mrb[1].mxu1  ;;  %v963_v6 = vpop.f32.mrb[2].mxu0 }
  0xfe   : > { %v470_v7 = vadd.f32 %v469_v5, %v368_v3  ;;  %v983_v8 = vpop.f32.mrb[2].mxu1  ;;  %v371_v9 = vpop.f32.mrb[3].mxu0 }
  0xff   : > { %v472_v10 = vpop.f32.mrb[3].mxu1 }
 0x100   : > { %v473_v11 = vadd.f32 %v472_v10, %v371_v9 }
 0x11b   : > { %v1002_v12 = vpop.f32.mrb[4].mxu0 }
 0x11c   : > { %v631_v13 = vadd.f32 %v1002_v12, %v478_v4  ;;  %v1022_v14 = vpop.f32.mrb[4].mxu1  ;;  %v615_v15 = vpop.f32.mrb[5].mxu0 }
 0x11d   : > { %v629_v17 = vadd.f32 %v615_v15, %v470_v7  ;;  %v740_v18 = vpop.f32.mrb[5].mxu1  ;;  %v1003_v19 = vpop.f32.mrb[6].mxu0 }
 0x11e   : > { %v756_v20 = vadd.f32 %v1022_v14, %v631_v13  ;;  %v1023_v21 = vpop.f32.mrb[6].mxu1  ;;  %v618_v22 = vpop.f32.mrb[7].mxu0 }
 0x11f   : > { %v754_v23 = vadd.f32 %v740_v18, %v629_v17  ;;  %v630_v24 = vadd.f32 %v618_v22, %v473_v11  ;;  %v743_v25 = vpop.f32.mrb[7].mxu1 }
 0x120   : > { %v766_v26 = vadd.f32 %v900_v16, %v756_v20 }
 0x121   : > { %v764_v27 = vadd.f32 %v900_v16, %v754_v23  ;;  %v755_v28 = vadd.f32 %v743_v25, %v630_v24 }
 0x122   : > { %v772_v29 = vmul.f32 0.2, %v766_v26  ;;  %vm769_vm3 = vcmp.gt.f32.partialorder %v766_v26, 0.0 }
 0x123   : > { %vm767_vm4 = vcmp.gt.f32.partialorder %v764_v27, 0.0  ;;  %v770_v30 = vmul.f32 0.2, %v764_v27  ;;  %v765_v31 = vadd.f32 %v900_v16, %v755_v28 }
 0x124   : > { %v775_v35 = vsel %vm769_vm3, %v766_v26, %v772_v29 }
 0x125   : > { %vm768_vm5 = vcmp.gt.f32.partialorder %v765_v31, 0.0  ;;  %v771_v33 = vmul.f32 0.2, %v765_v31  ;;  %v773_v34 = vsel %vm767_vm4, %v764_v27, %v770_v30  ;;  %v781_v41 = vmul.f32 %v778_v37, %v775_v35 }
 0x126   : > { %v779_v38 = vmul.f32 %v776_v32, %v773_v34 }
 0x127   : > { %v774_v39 = vsel %vm768_vm5, %v765_v31, %v771_v33  ;;  %v787_v45 = vsel %vm786_vm7, %v781_v41, 0.0 }
 0x128   : > { %v780_v40 = vmul.f32 %v777_v36, %v774_v39  ;;  %v783_v42 = vsel %vm782_vm6, %v779_v38, 0.0 }
 0x12a   : > { %v784_v43 = vsel %vm782_vm6, %v780_v40, 0.0 }
 0x12b   : > { %v785_v44 = vadd.f32 %v784_v43, %v783_v42 }
 0x12d   : > { %v788_v46 = vadd.f32 %v787_v45, %v785_v44 }
 0x12f   : > { %789 = vadd.xlane.f32.xlu0 %v788_v46 }
 0x1bc   : > { %v790_v47 = vpop.xlane.xlu0 %789 }
 0x1bd   : > { %v791_v48 = vrot.slane %v790_v47, 4 }
 0x1bf   : > { %v792_v49 = vadd.f32 %v791_v48, %v790_v47 }
 0x1c1   : > { %v793_v50 = vrot.slane %v792_v49, 2 }
 0x1c3   : > { %v794_v51 = vadd.f32 %v793_v50, %v792_v49 }
 0x1c5   : > { %v795_v52 = vrot.slane %v794_v51, 1 }
 0x1c7   : > { %v796_v53 = vadd.f32 %v795_v52, %v794_v51 }
 0x1c9   : > { %1024 = vpush %v796_v53 }
 0x1fa   : > { %s1025_s25 = spop %1024 }
 0x1fb   : > { %v798_v55 = vstv %s1025_s25 }
 0x1fc   : > { %v800_v56 = vadd.f32 %v799_v54, %v798_v55 }
 0x1fe   : > { %v801_v57 = vsub.f32 0.0, %v800_v56 }
 0x200   : > { %v802_v58 = vmul.f32 1.442695, %v801_v57 }
 0x202   : > { %1072 = vpow2.f32 %v802_v58 }
 0x20c   : > { %v1073_v59 = vpop.eup %1072 }
 0x20d   : > { %v804_v60 = vadd.f32 1.0, %v1073_v59 }
 0x20f   : > { %1074 = vrcp.f32 %v804_v60 }
 0x219   : > { %v1075_v61 = vpop.eup %1074 }
 0x21a   : > { %807 = vst.msk [vmem:[%s222_s28] sm:$0x1] %vm806_vm8, %v1075_v61 }
 0x21b PF: > { %s17_s20 = sadd.s32 1, %s1082_s20  }
 0x21c   : > { %p14_p4 = scmp.ge.s32.totalorder %s17_s20, 4  }
 0x21e   :  { %16 = sbr.rel (!%p14_p4) target bundleno = 3 (0x3), region = 70 }

</bundles_post_ra>
